<compile_context>
chip_gen: v6e
topology: v6e:2x2x1
jax: 0.10.0
libtpu: 0.0.40
codegen_flags: <defaults>
</compile_context>

<pallas_src>
import functools

import jax
import jax.numpy as jnp
from jax import lax
from jax.experimental import pallas as pl
from jax.experimental.pallas import tpu as pltpu  # noqa: F401  (TPU backend)

# ----------------------------- model hyper-params -----------------------------
PATCH = 8
EMBED_DIM = 32
NUM_HEADS = 4
HEAD_DIM = EMBED_DIM // NUM_HEADS
MLP_HIDDEN = 64
DEPTH = 2
HEAD_HIDDEN = 64
BOTTLENECK = 32
OUT_DIM = 64
LN_EPS = 1e-6
N_PAD = 8          # tokens per image padded to a sublane multiple (5 real + 3 pad)


# --------------------------------- fused kernel --------------------------------
def _fused_kernel(xaug_ref, waug_ref, pos_ref, hmask_ref, kbias_ref,
                  ln1g_ref, ln1b_ref, qkvw_ref, qkvb_ref,
                  projw_ref, projb_ref, ln2g_ref, ln2b_ref,
                  fc1w_ref, fc1b_ref, fc2w_ref, fc2b_ref,
                  ng_ref, nb_ref,
                  hw1_ref, hb1_ref, hw2_ref, hb2_ref, hw3_ref, hb3_ref,
                  lastw_ref, out_ref, *, batch):
    f32 = jnp.float32
    E, H, NP = EMBED_DIM, NUM_HEADS, N_PAD
    scale = 1.0 / (HEAD_DIM ** 0.5)

    def ln(x, g, b):
        mu = jnp.mean(x, axis=-1, keepdims=True)
        xc = x - mu
        var = jnp.mean(xc * xc, axis=-1, keepdims=True)
        return xc * lax.rsqrt(var + LN_EPS) * g + b

    def lin(x, w, b):
        return jnp.dot(x, w, preferred_element_type=f32) + b

    head_mask = hmask_ref[...]      # [H*NP, E] block-diagonal head selector (0/1)
    key_bias = kbias_ref[...]       # [1, H*NP] 0 for real keys, -1e30 for padded keys

    # Patch embed + bias + CLS token + positional embedding, all in one matmul.
    # x_aug rows: [patch_pixels | is_patch | is_cls]; w_aug rows: [patch_w; patch_b; cls].
    tok = lin(xaug_ref[...], waug_ref[...], pos_ref[...])        # [B*NP, E]

    for d in range(DEPTH):
        # ---------------- attention sub-block (pre-norm) ----------------
        h = ln(tok, ln1g_ref[d], ln1b_ref[d])
        qkv = lin(h, qkvw_ref[d], qkvb_ref[d])                   # [B*NP, 3E]

        attn_rows = []
        for b in range(batch):
            blk = qkv[b * NP:(b + 1) * NP, :]                    # [NP, 3E]
            q = blk[:, 0:E] * scale
            k = blk[:, E:2 * E]
            v = blk[:, 2 * E:3 * E]
            # Pack all heads into one lane-dense contraction via the block-diag mask:
            # k_big[h*NP + j, e] = k[j, e] * (e // HEAD_DIM == h)
            k_big = jnp.concatenate([k] * H, axis=0) * head_mask  # [H*NP, E]
            v_big = jnp.concatenate([v] * H, axis=0) * head_mask  # [H*NP, E]
            # s[i, h*NP + j] = sum_d q[i, h*D+d] * k[j, h*D+d]
            s = jnp.einsum("ie,ce->ic", q, k_big,
                           preferred_element_type=f32) + key_bias  # [NP, H*NP]
            # Global row max is a valid per-head-block softmax stabilizer.
            s = s - jnp.max(s, axis=-1, keepdims=True)
            p = jnp.exp(s)                                        # pad keys -> exactly 0
            o_un = jnp.dot(p, v_big, preferred_element_type=f32)  # [NP, E]
            den = jnp.dot(p, head_mask, preferred_element_type=f32)  # per-head denom
            attn_rows.append(o_un * pl.reciprocal(den, approx=True))
        attn = jnp.concatenate(attn_rows, axis=0)                 # [B*NP, E]
        tok = tok + lin(attn, projw_ref[d], projb_ref[d])

        # ---------------- MLP sub-block (pre-norm) ----------------
        h = ln(tok, ln2g_ref[d], ln2b_ref[d])
        h = jax.nn.gelu(lin(h, fc1w_ref[d], fc1b_ref[d]), approximate=True)
        tok = tok + lin(h, fc2w_ref[d], fc2b_ref[d])

    # -------- backbone.norm + DINO head on CLS tokens only (rows b*NP) --------
    cls = jnp.concatenate([tok[b * NP:b * NP + 1, :] for b in range(batch)], axis=0)
    cls = ln(cls, ng_ref[...], nb_ref[...])
    h1 = jax.nn.gelu(lin(cls, hw1_ref[...], hb1_ref[...]), approximate=True)
    h2 = jax.nn.gelu(lin(h1, hw2_ref[...], hb2_ref[...]), approximate=True)
    h3 = lin(h2, hw3_ref[...], hb3_ref[...])
    # F.normalize(x, p=2, dim=-1, eps=1e-12)
    nrm = jnp.sqrt(jnp.sum(h3 * h3, axis=-1, keepdims=True))
    xn = h3 / jnp.maximum(nrm, 1e-12)
    out_ref[...] = jnp.dot(xn, lastw_ref[...],
                           preferred_element_type=f32).astype(out_ref.dtype)


# --------------------------- parameter construction ---------------------------
def init_params(key, in_chans):
    ks = iter(jax.random.split(key, 64))

    def w(shape, scale=0.02):
        return (scale * jax.random.normal(next(ks), shape)).astype(jnp.float32)

    def zeros(shape):
        return jnp.zeros(shape, jnp.float32)

    def ones(shape):
        return jnp.ones(shape, jnp.float32)

    def stack(fn):
        return jnp.stack([fn() for _ in range(DEPTH)], axis=0)

    n_tokens = (16 // PATCH) * (16 // PATCH) + 1

    params = {
        # patch embed: conv(k=stride=PATCH) == per-patch linear over (C, p, p) flat
        "patch_w": w((in_chans * PATCH * PATCH, EMBED_DIM)),
        "patch_b": zeros((1, EMBED_DIM)),
        "cls_token": w((1, EMBED_DIM)),
        "pos_embed": w((n_tokens, EMBED_DIM)),
        "norm_g": ones((1, EMBED_DIM)),
        "norm_b": zeros((1, EMBED_DIM)),
        # DINO head MLP
        "head_w1": w((EMBED_DIM, HEAD_HIDDEN)),
        "head_b1": zeros((1, HEAD_HIDDEN)),
        "head_w2": w((HEAD_HIDDEN, HEAD_HIDDEN)),
        "head_b2": zeros((1, HEAD_HIDDEN)),
        "head_w3": w((HEAD_HIDDEN, BOTTLENECK)),
        "head_b3": zeros((1, BOTTLENECK)),
        # transformer blocks, stacked on a leading [DEPTH, ...] axis
        "blk_ln1_g": stack(lambda: ones((1, EMBED_DIM))),
        "blk_ln1_b": stack(lambda: zeros((1, EMBED_DIM))),
        "blk_qkv_w": stack(lambda: w((EMBED_DIM, 3 * EMBED_DIM))),
        "blk_qkv_b": stack(lambda: zeros((1, 3 * EMBED_DIM))),
        "blk_proj_w": stack(lambda: w((EMBED_DIM, EMBED_DIM))),
        "blk_proj_b": stack(lambda: zeros((1, EMBED_DIM))),
        "blk_ln2_g": stack(lambda: ones((1, EMBED_DIM))),
        "blk_ln2_b": stack(lambda: zeros((1, EMBED_DIM))),
        "blk_fc1_w": stack(lambda: w((EMBED_DIM, MLP_HIDDEN))),
        "blk_fc1_b": stack(lambda: zeros((1, MLP_HIDDEN))),
        "blk_fc2_w": stack(lambda: w((MLP_HIDDEN, EMBED_DIM))),
        "blk_fc2_b": stack(lambda: zeros((1, EMBED_DIM))),
    }

    # weight_norm(Linear(BOTTLENECK, OUT_DIM, bias=False)), g initialized to 1 -> fold
    v = w((OUT_DIM, BOTTLENECK))                     # PyTorch weight layout [out, in]
    g = ones((OUT_DIM, 1))
    wn = g * v / jnp.sqrt(jnp.sum(v * v, axis=1, keepdims=True))
    params["last_w"] = wn.T                          # [BOTTLENECK, OUT_DIM] for x @ W

    return params


# --------------------------------- forward ------------------------------------
def backbone_head_wrapper_forward(params, x):
    """x: NCHW float32 image batch. Returns [B, OUT_DIM] (CLS-token head output)."""
    B, C, H, W = x.shape
    p = PATCH
    gh, gw = H // p, W // p
    npatch = gh * gw
    n_tok = npatch + 1
    F = C * p * p
    assert n_tok <= N_PAD

    # ---- glue (one-time XLA layout work; all compute happens in the fused kernel) ----
    # patchify: NCHW -> [B, npatch, C*p*p]  (matches conv weight (C, kh, kw) order)
    xp = (x.reshape(B, C, gh, p, gw, p)
            .transpose(0, 2, 4, 1, 3, 5)
            .reshape(B, npatch, F))
    # augmented, row-padded token inputs: per image [CLS, patch_0..3, pad, pad, pad]
    x_rows = jnp.zeros((B, N_PAD, F + 2), jnp.float32)
    x_rows = x_rows.at[:, 0, F + 1].set(1.0)              # CLS indicator column
    x_rows = x_rows.at[:, 1:1 + npatch, :F].set(xp)       # patch pixels
    x_rows = x_rows.at[:, 1:1 + npatch, F].set(1.0)       # patch-bias indicator column
    x_aug = x_rows.reshape(B * N_PAD, F + 2)

    w_aug = jnp.concatenate(
        [params["patch_w"], params["patch_b"], params["cls_token"]], axis=0)  # [F+2, E]

    pos_pad = jnp.zeros((N_PAD, EMBED_DIM), jnp.float32).at[:n_tok].set(
        params["pos_embed"])
    pos_pad = jnp.tile(pos_pad, (B, 1))                   # [B*N_PAD, E]

    # static masks for packed multi-head attention
    r = jnp.arange(NUM_HEADS * N_PAD)[:, None]
    c = jnp.arange(EMBED_DIM)[None, :]
    head_mask = ((r // N_PAD) == (c // HEAD_DIM)).astype(jnp.float32)   # [H*NP, E]
    cols = jnp.arange(NUM_HEADS * N_PAD)[None, :]
    key_bias = jnp.where((cols % N_PAD) < n_tok, 0.0, -1e30).astype(jnp.float32)

    kernel = functools.partial(_fused_kernel, batch=B)
    return pl.pallas_call(
        kernel,
        out_shape=jax.ShapeDtypeStruct((B, OUT_DIM), jnp.float32),
    )(x_aug, w_aug, pos_pad, head_mask, key_bias,
      params["blk_ln1_g"], params["blk_ln1_b"],
      params["blk_qkv_w"], params["blk_qkv_b"],
      params["blk_proj_w"], params["blk_proj_b"],
      params["blk_ln2_g"], params["blk_ln2_b"],
      params["blk_fc1_w"], params["blk_fc1_b"],
      params["blk_fc2_w"], params["blk_fc2_b"],
      params["norm_g"], params["norm_b"],
      params["head_w1"], params["head_b1"],
      params["head_w2"], params["head_b2"],
      params["head_w3"], params["head_b3"],
      params["last_w"])


# ----------------------------------- main --------------------------------------
if __name__ == "__main__":
    key = jax.random.PRNGKey(0)
    k_param, k_x = jax.random.split(key)

    B, C, H, W = 2, 4, 16, 16
    x = jax.random.normal(k_x, (B, C, H, W), dtype=jnp.float32)
    params = init_params(k_param, in_chans=C)

    fwd = jax.jit(backbone_head_wrapper_forward)
    y = fwd(params, x)
    jax.block_until_ready(y)

    assert y.shape == (B, OUT_DIM) and y.dtype == jnp.float32
    assert bool(jnp.all(jnp.isfinite(y)))
    print("KERNEL_OK")
</pallas_src>

<mosaic_0001>
module attributes {stable_mosaic.version = 11 : i64} {
  func.func @_fused_kernel(%arg0: memref<16x258xf32, #tpu.memory_space<vmem>>, %arg1: memref<258x32xf32, #tpu.memory_space<vmem>>, %arg2: memref<16x32xf32, #tpu.memory_space<vmem>>, %arg3: memref<32x32xf32, #tpu.memory_space<vmem>>, %arg4: memref<1x32xf32, #tpu.memory_space<vmem>>, %arg5: memref<2x1x32xf32, #tpu.memory_space<vmem>>, %arg6: memref<2x1x32xf32, #tpu.memory_space<vmem>>, %arg7: memref<2x32x96xf32, #tpu.memory_space<vmem>>, %arg8: memref<2x1x96xf32, #tpu.memory_space<vmem>>, %arg9: memref<2x32x32xf32, #tpu.memory_space<vmem>>, %arg10: memref<2x1x32xf32, #tpu.memory_space<vmem>>, %arg11: memref<2x1x32xf32, #tpu.memory_space<vmem>>, %arg12: memref<2x1x32xf32, #tpu.memory_space<vmem>>, %arg13: memref<2x32x64xf32, #tpu.memory_space<vmem>>, %arg14: memref<2x1x64xf32, #tpu.memory_space<vmem>>, %arg15: memref<2x64x32xf32, #tpu.memory_space<vmem>>, %arg16: memref<2x1x32xf32, #tpu.memory_space<vmem>>, %arg17: memref<1x32xf32, #tpu.memory_space<vmem>>, %arg18: memref<1x32xf32, #tpu.memory_space<vmem>>, %arg19: memref<32x64xf32, #tpu.memory_space<vmem>>, %arg20: memref<1x64xf32, #tpu.memory_space<vmem>>, %arg21: memref<64x64xf32, #tpu.memory_space<vmem>>, %arg22: memref<1x64xf32, #tpu.memory_space<vmem>>, %arg23: memref<64x32xf32, #tpu.memory_space<vmem>>, %arg24: memref<1x32xf32, #tpu.memory_space<vmem>>, %arg25: memref<32x64xf32, #tpu.memory_space<vmem>>, %arg26: memref<2x64xf32, #tpu.memory_space<vmem>>) attributes {dimension_semantics = [], scalar_prefetch = 0 : i64, scratch_operands = 0 : i64, tpu.core_type = #tpu.core_type<tc>} {
    %c0 = arith.constant 0 : index
    %c0_0 = arith.constant 0 : index
    %0 = vector.load %arg3[%c0, %c0_0] : memref<32x32xf32, #tpu.memory_space<vmem>>, vector<32x32xf32>
    %c0_1 = arith.constant 0 : index
    %c0_2 = arith.constant 0 : index
    %1 = vector.load %arg4[%c0_1, %c0_2] : memref<1x32xf32, #tpu.memory_space<vmem>>, vector<1x32xf32>
    %c0_3 = arith.constant 0 : index
    %c0_4 = arith.constant 0 : index
    %2 = vector.load %arg0[%c0_3, %c0_4] : memref<16x258xf32, #tpu.memory_space<vmem>>, vector<16x258xf32>
    %c0_5 = arith.constant 0 : index
    %c0_6 = arith.constant 0 : index
    %3 = vector.load %arg1[%c0_5, %c0_6] : memref<258x32xf32, #tpu.memory_space<vmem>>, vector<258x32xf32>
    %c0_7 = arith.constant 0 : index
    %c0_8 = arith.constant 0 : index
    %4 = vector.load %arg2[%c0_7, %c0_8] : memref<16x32xf32, #tpu.memory_space<vmem>>, vector<16x32xf32>
    %cst = arith.constant dense<0.000000e+00> : vector<16x32xf32>
    %5 = tpu.matmul %2, %3, %cst {dimension_numbers = #tpu.dot_dimension_numbers<[1], [0], [0], [1], [0, 0, 1, 1], [], []>} : vector<16x258xf32>, vector<258x32xf32>, vector<16x32xf32> -> vector<16x32xf32>
    %6 = arith.addf %5, %4 : vector<16x32xf32>
    %c0_9 = arith.constant 0 : index
    %c0_10 = arith.constant 0 : index
    %c0_11 = arith.constant 0 : index
    %7 = vector.load %arg5[%c0_9, %c0_10, %c0_11] : memref<2x1x32xf32, #tpu.memory_space<vmem>>, vector<1x1x32xf32>
    %8 = vector.shape_cast %7 : vector<1x1x32xf32> to vector<1x32xf32>
    %c0_12 = arith.constant 0 : index
    %c0_13 = arith.constant 0 : index
    %c0_14 = arith.constant 0 : index
    %9 = vector.load %arg6[%c0_12, %c0_13, %c0_14] : memref<2x1x32xf32, #tpu.memory_space<vmem>>, vector<1x1x32xf32>
    %10 = vector.shape_cast %9 : vector<1x1x32xf32> to vector<1x32xf32>
    %cst_15 = arith.constant dense<0.000000e+00> : vector<16xf32>
    %11 = vector.multi_reduction <add>, %6, %cst_15 [1] : vector<16x32xf32> to vector<16xf32>
    %12 = vector.shape_cast %11 : vector<16xf32> to vector<16x1xf32>
    %cst_16 = arith.constant 3.200000e+01 : f32
    %13 = vector.broadcast %cst_16 : f32 to vector<16x1xf32>
    %14 = arith.divf %12, %13 : vector<16x1xf32>
    %15 = vector.broadcast %14 : vector<16x1xf32> to vector<16x32xf32>
    %16 = arith.subf %6, %15 : vector<16x32xf32>
    %17 = arith.mulf %16, %16 : vector<16x32xf32>
    %cst_17 = arith.constant dense<0.000000e+00> : vector<16xf32>
    %18 = vector.multi_reduction <add>, %17, %cst_17 [1] : vector<16x32xf32> to vector<16xf32>
    %19 = vector.shape_cast %18 : vector<16xf32> to vector<16x1xf32>
    %cst_18 = arith.constant 3.200000e+01 : f32
    %20 = vector.broadcast %cst_18 : f32 to vector<16x1xf32>
    %21 = arith.divf %19, %20 : vector<16x1xf32>
    %cst_19 = arith.constant 9.99999997E-7 : f32
    %22 = vector.broadcast %cst_19 : f32 to vector<16x1xf32>
    %23 = arith.addf %21, %22 : vector<16x1xf32>
    %24 = math.rsqrt %23 : vector<16x1xf32>
    %25 = vector.broadcast %24 : vector<16x1xf32> to vector<16x32xf32>
    %26 = arith.mulf %16, %25 : vector<16x32xf32>
    %27 = vector.broadcast %8 : vector<1x32xf32> to vector<16x32xf32>
    %28 = arith.mulf %26, %27 : vector<16x32xf32>
    %29 = vector.broadcast %10 : vector<1x32xf32> to vector<16x32xf32>
    %30 = arith.addf %28, %29 : vector<16x32xf32>
    %c0_20 = arith.constant 0 : index
    %c0_21 = arith.constant 0 : index
    %c0_22 = arith.constant 0 : index
    %31 = vector.load %arg7[%c0_20, %c0_21, %c0_22] : memref<2x32x96xf32, #tpu.memory_space<vmem>>, vector<1x32x96xf32>
    %32 = vector.shape_cast %31 : vector<1x32x96xf32> to vector<32x96xf32>
    %c0_23 = arith.constant 0 : index
    %c0_24 = arith.constant 0 : index
    %c0_25 = arith.constant 0 : index
    %33 = vector.load %arg8[%c0_23, %c0_24, %c0_25] : memref<2x1x96xf32, #tpu.memory_space<vmem>>, vector<1x1x96xf32>
    %34 = vector.shape_cast %33 : vector<1x1x96xf32> to vector<1x96xf32>
    %cst_26 = arith.constant dense<0.000000e+00> : vector<16x96xf32>
    %35 = tpu.matmul %30, %32, %cst_26 {dimension_numbers = #tpu.dot_dimension_numbers<[1], [0], [0], [1], [0, 0, 1, 1], [], []>} : vector<16x32xf32>, vector<32x96xf32>, vector<16x96xf32> -> vector<16x96xf32>
    %36 = vector.broadcast %34 : vector<1x96xf32> to vector<16x96xf32>
    %37 = arith.addf %35, %36 : vector<16x96xf32>
    %38 = vector.extract_strided_slice %37 {offsets = [0, 0], sizes = [8, 96], strides = [1, 1]} : vector<16x96xf32> to vector<8x96xf32>
    %39 = vector.extract_strided_slice %38 {offsets = [0, 0], sizes = [8, 32], strides = [1, 1]} : vector<8x96xf32> to vector<8x32xf32>
    %cst_27 = arith.constant 0.353553385 : f32
    %40 = vector.broadcast %cst_27 : f32 to vector<8x32xf32>
    %41 = arith.mulf %39, %40 : vector<8x32xf32>
    %42 = vector.extract_strided_slice %38 {offsets = [0, 32], sizes = [8, 32], strides = [1, 1]} : vector<8x96xf32> to vector<8x32xf32>
    %43 = vector.extract_strided_slice %38 {offsets = [0, 64], sizes = [8, 32], strides = [1, 1]} : vector<8x96xf32> to vector<8x32xf32>
    %44 = tpu.concatenate %42, %42, %42, %42 in 0 : vector<8x32xf32>, vector<8x32xf32>, vector<8x32xf32>, vector<8x32xf32> -> vector<32x32xf32>
    %45 = arith.mulf %44, %0 : vector<32x32xf32>
    %46 = tpu.concatenate %43, %43, %43, %43 in 0 : vector<8x32xf32>, vector<8x32xf32>, vector<8x32xf32>, vector<8x32xf32> -> vector<32x32xf32>
    %47 = arith.mulf %46, %0 : vector<32x32xf32>
    "tpu.trace_start"() <{level = 10 : i32, message = "ie,ce->ic"}> : () -> ()
    %cst_28 = arith.constant dense<0.000000e+00> : vector<8x32xf32>
    %48 = tpu.matmul %41, %45, %cst_28 {dimension_numbers = #tpu.dot_dimension_numbers<[1], [1], [0], [0], [0, 0, 1, 0], [], []>} : vector<8x32xf32>, vector<32x32xf32>, vector<8x32xf32> -> vector<8x32xf32>
    "tpu.trace_stop"() : () -> ()
    %49 = vector.broadcast %1 : vector<1x32xf32> to vector<8x32xf32>
    %50 = arith.addf %48, %49 : vector<8x32xf32>
    %cst_29 = arith.constant dense<0xFF800000> : vector<8xf32>
    %51 = vector.multi_reduction <maximumf>, %50, %cst_29 [1] : vector<8x32xf32> to vector<8xf32>
    %52 = vector.shape_cast %51 : vector<8xf32> to vector<8x1xf32>
    %53 = vector.broadcast %52 : vector<8x1xf32> to vector<8x32xf32>
    %54 = arith.subf %50, %53 : vector<8x32xf32>
    %55 = math.exp %54 : vector<8x32xf32>
    %cst_30 = arith.constant dense<0.000000e+00> : vector<8x32xf32>
    %56 = tpu.matmul %55, %47, %cst_30 {dimension_numbers = #tpu.dot_dimension_numbers<[1], [0], [0], [1], [0, 0, 1, 1], [], []>} : vector<8x32xf32>, vector<32x32xf32>, vector<8x32xf32> -> vector<8x32xf32>
    %cst_31 = arith.constant dense<0.000000e+00> : vector<8x32xf32>
    %57 = tpu.matmul %55, %0, %cst_31 {dimension_numbers = #tpu.dot_dimension_numbers<[1], [0], [0], [1], [0, 0, 1, 1], [], []>} : vector<8x32xf32>, vector<32x32xf32>, vector<8x32xf32> -> vector<8x32xf32>
    %58 = tpu.reciprocal %57 {approx = true} : vector<8x32xf32> -> vector<8x32xf32>
    %59 = arith.mulf %56, %58 : vector<8x32xf32>
    %60 = vector.extract_strided_slice %37 {offsets = [8, 0], sizes = [8, 96], strides = [1, 1]} : vector<16x96xf32> to vector<8x96xf32>
    %61 = vector.extract_strided_slice %60 {offsets = [0, 0], sizes = [8, 32], strides = [1, 1]} : vector<8x96xf32> to vector<8x32xf32>
    %cst_32 = arith.constant 0.353553385 : f32
    %62 = vector.broadcast %cst_32 : f32 to vector<8x32xf32>
    %63 = arith.mulf %61, %62 : vector<8x32xf32>
    %64 = vector.extract_strided_slice %60 {offsets = [0, 32], sizes = [8, 32], strides = [1, 1]} : vector<8x96xf32> to vector<8x32xf32>
    %65 = vector.extract_strided_slice %60 {offsets = [0, 64], sizes = [8, 32], strides = [1, 1]} : vector<8x96xf32> to vector<8x32xf32>
    %66 = tpu.concatenate %64, %64, %64, %64 in 0 : vector<8x32xf32>, vector<8x32xf32>, vector<8x32xf32>, vector<8x32xf32> -> vector<32x32xf32>
    %67 = arith.mulf %66, %0 : vector<32x32xf32>
    %68 = tpu.concatenate %65, %65, %65, %65 in 0 : vector<8x32xf32>, vector<8x32xf32>, vector<8x32xf32>, vector<8x32xf32> -> vector<32x32xf32>
    %69 = arith.mulf %68, %0 : vector<32x32xf32>
    "tpu.trace_start"() <{level = 10 : i32, message = "ie,ce->ic"}> : () -> ()
    %cst_33 = arith.constant dense<0.000000e+00> : vector<8x32xf32>
    %70 = tpu.matmul %63, %67, %cst_33 {dimension_numbers = #tpu.dot_dimension_numbers<[1], [1], [0], [0], [0, 0, 1, 0], [], []>} : vector<8x32xf32>, vector<32x32xf32>, vector<8x32xf32> -> vector<8x32xf32>
    "tpu.trace_stop"() : () -> ()
    %71 = vector.broadcast %1 : vector<1x32xf32> to vector<8x32xf32>
    %72 = arith.addf %70, %71 : vector<8x32xf32>
    %cst_34 = arith.constant dense<0xFF800000> : vector<8xf32>
    %73 = vector.multi_reduction <maximumf>, %72, %cst_34 [1] : vector<8x32xf32> to vector<8xf32>
    %74 = vector.shape_cast %73 : vector<8xf32> to vector<8x1xf32>
    %75 = vector.broadcast %74 : vector<8x1xf32> to vector<8x32xf32>
    %76 = arith.subf %72, %75 : vector<8x32xf32>
    %77 = math.exp %76 : vector<8x32xf32>
    %cst_35 = arith.constant dense<0.000000e+00> : vector<8x32xf32>
    %78 = tpu.matmul %77, %69, %cst_35 {dimension_numbers = #tpu.dot_dimension_numbers<[1], [0], [0], [1], [0, 0, 1, 1], [], []>} : vector<8x32xf32>, vector<32x32xf32>, vector<8x32xf32> -> vector<8x32xf32>
    %cst_36 = arith.constant dense<0.000000e+00> : vector<8x32xf32>
    %79 = tpu.matmul %77, %0, %cst_36 {dimension_numbers = #tpu.dot_dimension_numbers<[1], [0], [0], [1], [0, 0, 1, 1], [], []>} : vector<8x32xf32>, vector<32x32xf32>, vector<8x32xf32> -> vector<8x32xf32>
    %80 = tpu.reciprocal %79 {approx = true} : vector<8x32xf32> -> vector<8x32xf32>
    %81 = arith.mulf %78, %80 : vector<8x32xf32>
    %82 = tpu.concatenate %59, %81 in 0 : vector<8x32xf32>, vector<8x32xf32> -> vector<16x32xf32>
    %c0_37 = arith.constant 0 : index
    %c0_38 = arith.constant 0 : index
    %c0_39 = arith.constant 0 : index
    %83 = vector.load %arg9[%c0_37, %c0_38, %c0_39] : memref<2x32x32xf32, #tpu.memory_space<vmem>>, vector<1x32x32xf32>
    %84 = vector.shape_cast %83 : vector<1x32x32xf32> to vector<32x32xf32>
    %c0_40 = arith.constant 0 : index
    %c0_41 = arith.constant 0 : index
    %c0_42 = arith.constant 0 : index
    %85 = vector.load %arg10[%c0_40, %c0_41, %c0_42] : memref<2x1x32xf32, #tpu.memory_space<vmem>>, vector<1x1x32xf32>
    %86 = vector.shape_cast %85 : vector<1x1x32xf32> to vector<1x32xf32>
    %cst_43 = arith.constant dense<0.000000e+00> : vector<16x32xf32>
    %87 = tpu.matmul %82, %84, %cst_43 {dimension_numbers = #tpu.dot_dimension_numbers<[1], [0], [0], [1], [0, 0, 1, 1], [], []>} : vector<16x32xf32>, vector<32x32xf32>, vector<16x32xf32> -> vector<16x32xf32>
    %88 = vector.broadcast %86 : vector<1x32xf32> to vector<16x32xf32>
    %89 = arith.addf %87, %88 : vector<16x32xf32>
    %90 = arith.addf %6, %89 : vector<16x32xf32>
    %c0_44 = arith.constant 0 : index
    %c0_45 = arith.constant 0 : index
    %c0_46 = arith.constant 0 : index
    %91 = vector.load %arg11[%c0_44, %c0_45, %c0_46] : memref<2x1x32xf32, #tpu.memory_space<vmem>>, vector<1x1x32xf32>
    %92 = vector.shape_cast %91 : vector<1x1x32xf32> to vector<1x32xf32>
    %c0_47 = arith.constant 0 : index
    %c0_48 = arith.constant 0 : index
    %c0_49 = arith.constant 0 : index
    %93 = vector.load %arg12[%c0_47, %c0_48, %c0_49] : memref<2x1x32xf32, #tpu.memory_space<vmem>>, vector<1x1x32xf32>
    %94 = vector.shape_cast %93 : vector<1x1x32xf32> to vector<1x32xf32>
    %cst_50 = arith.constant dense<0.000000e+00> : vector<16xf32>
    %95 = vector.multi_reduction <add>, %90, %cst_50 [1] : vector<16x32xf32> to vector<16xf32>
    %96 = vector.shape_cast %95 : vector<16xf32> to vector<16x1xf32>
    %cst_51 = arith.constant 3.200000e+01 : f32
    %97 = vector.broadcast %cst_51 : f32 to vector<16x1xf32>
    %98 = arith.divf %96, %97 : vector<16x1xf32>
    %99 = vector.broadcast %98 : vector<16x1xf32> to vector<16x32xf32>
    %100 = arith.subf %90, %99 : vector<16x32xf32>
    %101 = arith.mulf %100, %100 : vector<16x32xf32>
    %cst_52 = arith.constant dense<0.000000e+00> : vector<16xf32>
    %102 = vector.multi_reduction <add>, %101, %cst_52 [1] : vector<16x32xf32> to vector<16xf32>
    %103 = vector.shape_cast %102 : vector<16xf32> to vector<16x1xf32>
    %cst_53 = arith.constant 3.200000e+01 : f32
    %104 = vector.broadcast %cst_53 : f32 to vector<16x1xf32>
    %105 = arith.divf %103, %104 : vector<16x1xf32>
    %cst_54 = arith.constant 9.99999997E-7 : f32
    %106 = vector.broadcast %cst_54 : f32 to vector<16x1xf32>
    %107 = arith.addf %105, %106 : vector<16x1xf32>
    %108 = math.rsqrt %107 : vector<16x1xf32>
    %109 = vector.broadcast %108 : vector<16x1xf32> to vector<16x32xf32>
    %110 = arith.mulf %100, %109 : vector<16x32xf32>
    %111 = vector.broadcast %92 : vector<1x32xf32> to vector<16x32xf32>
    %112 = arith.mulf %110, %111 : vector<16x32xf32>
    %113 = vector.broadcast %94 : vector<1x32xf32> to vector<16x32xf32>
    %114 = arith.addf %112, %113 : vector<16x32xf32>
    %c0_55 = arith.constant 0 : index
    %c0_56 = arith.constant 0 : index
    %c0_57 = arith.constant 0 : index
    %115 = vector.load %arg13[%c0_55, %c0_56, %c0_57] : memref<2x32x64xf32, #tpu.memory_space<vmem>>, vector<1x32x64xf32>
    %116 = vector.shape_cast %115 : vector<1x32x64xf32> to vector<32x64xf32>
    %c0_58 = arith.constant 0 : index
    %c0_59 = arith.constant 0 : index
    %c0_60 = arith.constant 0 : index
    %117 = vector.load %arg14[%c0_58, %c0_59, %c0_60] : memref<2x1x64xf32, #tpu.memory_space<vmem>>, vector<1x1x64xf32>
    %118 = vector.shape_cast %117 : vector<1x1x64xf32> to vector<1x64xf32>
    %cst_61 = arith.constant dense<0.000000e+00> : vector<16x64xf32>
    %119 = tpu.matmul %114, %116, %cst_61 {dimension_numbers = #tpu.dot_dimension_numbers<[1], [0], [0], [1], [0, 0, 1, 1], [], []>} : vector<16x32xf32>, vector<32x64xf32>, vector<16x64xf32> -> vector<16x64xf32>
    %120 = vector.broadcast %118 : vector<1x64xf32> to vector<16x64xf32>
    %121 = arith.addf %119, %120 : vector<16x64xf32>
    %122 = arith.mulf %121, %121 : vector<16x64xf32>
    %123 = arith.mulf %121, %122 : vector<16x64xf32>
    %cst_62 = arith.constant 4.471500e-02 : f32
    %124 = vector.broadcast %cst_62 : f32 to vector<16x64xf32>
    %125 = arith.mulf %124, %123 : vector<16x64xf32>
    %126 = arith.addf %121, %125 : vector<16x64xf32>
    %cst_63 = arith.constant 0.797884583 : f32
    %127 = vector.broadcast %cst_63 : f32 to vector<16x64xf32>
    %128 = arith.mulf %127, %126 : vector<16x64xf32>
    %129 = math.tanh %128 : vector<16x64xf32>
    %cst_64 = arith.constant 1.000000e+00 : f32
    %130 = vector.broadcast %cst_64 : f32 to vector<16x64xf32>
    %131 = arith.addf %130, %129 : vector<16x64xf32>
    %cst_65 = arith.constant 5.000000e-01 : f32
    %132 = vector.broadcast %cst_65 : f32 to vector<16x64xf32>
    %133 = arith.mulf %132, %131 : vector<16x64xf32>
    %134 = arith.mulf %121, %133 : vector<16x64xf32>
    %c0_66 = arith.constant 0 : index
    %c0_67 = arith.constant 0 : index
    %c0_68 = arith.constant 0 : index
    %135 = vector.load %arg15[%c0_66, %c0_67, %c0_68] : memref<2x64x32xf32, #tpu.memory_space<vmem>>, vector<1x64x32xf32>
    %136 = vector.shape_cast %135 : vector<1x64x32xf32> to vector<64x32xf32>
    %c0_69 = arith.constant 0 : index
    %c0_70 = arith.constant 0 : index
    %c0_71 = arith.constant 0 : index
    %137 = vector.load %arg16[%c0_69, %c0_70, %c0_71] : memref<2x1x32xf32, #tpu.memory_space<vmem>>, vector<1x1x32xf32>
    %138 = vector.shape_cast %137 : vector<1x1x32xf32> to vector<1x32xf32>
    %cst_72 = arith.constant dense<0.000000e+00> : vector<16x32xf32>
    %139 = tpu.matmul %134, %136, %cst_72 {dimension_numbers = #tpu.dot_dimension_numbers<[1], [0], [0], [1], [0, 0, 1, 1], [], []>} : vector<16x64xf32>, vector<64x32xf32>, vector<16x32xf32> -> vector<16x32xf32>
    %140 = vector.broadcast %138 : vector<1x32xf32> to vector<16x32xf32>
    %141 = arith.addf %139, %140 : vector<16x32xf32>
    %142 = arith.addf %90, %141 : vector<16x32xf32>
    %c1 = arith.constant 1 : index
    %c0_73 = arith.constant 0 : index
    %c0_74 = arith.constant 0 : index
    %143 = vector.load %arg5[%c1, %c0_73, %c0_74] : memref<2x1x32xf32, #tpu.memory_space<vmem>>, vector<1x1x32xf32>
    %144 = vector.shape_cast %143 : vector<1x1x32xf32> to vector<1x32xf32>
    %c1_75 = arith.constant 1 : index
    %c0_76 = arith.constant 0 : index
    %c0_77 = arith.constant 0 : index
    %145 = vector.load %arg6[%c1_75, %c0_76, %c0_77] : memref<2x1x32xf32, #tpu.memory_space<vmem>>, vector<1x1x32xf32>
    %146 = vector.shape_cast %145 : vector<1x1x32xf32> to vector<1x32xf32>
    %cst_78 = arith.constant dense<0.000000e+00> : vector<16xf32>
    %147 = vector.multi_reduction <add>, %142, %cst_78 [1] : vector<16x32xf32> to vector<16xf32>
    %148 = vector.shape_cast %147 : vector<16xf32> to vector<16x1xf32>
    %cst_79 = arith.constant 3.200000e+01 : f32
    %149 = vector.broadcast %cst_79 : f32 to vector<16x1xf32>
    %150 = arith.divf %148, %149 : vector<16x1xf32>
    %151 = vector.broadcast %150 : vector<16x1xf32> to vector<16x32xf32>
    %152 = arith.subf %142, %151 : vector<16x32xf32>
    %153 = arith.mulf %152, %152 : vector<16x32xf32>
    %cst_80 = arith.constant dense<0.000000e+00> : vector<16xf32>
    %154 = vector.multi_reduction <add>, %153, %cst_80 [1] : vector<16x32xf32> to vector<16xf32>
    %155 = vector.shape_cast %154 : vector<16xf32> to vector<16x1xf32>
    %cst_81 = arith.constant 3.200000e+01 : f32
    %156 = vector.broadcast %cst_81 : f32 to vector<16x1xf32>
    %157 = arith.divf %155, %156 : vector<16x1xf32>
    %cst_82 = arith.constant 9.99999997E-7 : f32
    %158 = vector.broadcast %cst_82 : f32 to vector<16x1xf32>
    %159 = arith.addf %157, %158 : vector<16x1xf32>
    %160 = math.rsqrt %159 : vector<16x1xf32>
    %161 = vector.broadcast %160 : vector<16x1xf32> to vector<16x32xf32>
    %162 = arith.mulf %152, %161 : vector<16x32xf32>
    %163 = vector.broadcast %144 : vector<1x32xf32> to vector<16x32xf32>
    %164 = arith.mulf %162, %163 : vector<16x32xf32>
    %165 = vector.broadcast %146 : vector<1x32xf32> to vector<16x32xf32>
    %166 = arith.addf %164, %165 : vector<16x32xf32>
    %c1_83 = arith.constant 1 : index
    %c0_84 = arith.constant 0 : index
    %c0_85 = arith.constant 0 : index
    %167 = vector.load %arg7[%c1_83, %c0_84, %c0_85] : memref<2x32x96xf32, #tpu.memory_space<vmem>>, vector<1x32x96xf32>
    %168 = vector.shape_cast %167 : vector<1x32x96xf32> to vector<32x96xf32>
    %c1_86 = arith.constant 1 : index
    %c0_87 = arith.constant 0 : index
    %c0_88 = arith.constant 0 : index
    %169 = vector.load %arg8[%c1_86, %c0_87, %c0_88] : memref<2x1x96xf32, #tpu.memory_space<vmem>>, vector<1x1x96xf32>
    %170 = vector.shape_cast %169 : vector<1x1x96xf32> to vector<1x96xf32>
    %cst_89 = arith.constant dense<0.000000e+00> : vector<16x96xf32>
    %171 = tpu.matmul %166, %168, %cst_89 {dimension_numbers = #tpu.dot_dimension_numbers<[1], [0], [0], [1], [0, 0, 1, 1], [], []>} : vector<16x32xf32>, vector<32x96xf32>, vector<16x96xf32> -> vector<16x96xf32>
    %172 = vector.broadcast %170 : vector<1x96xf32> to vector<16x96xf32>
    %173 = arith.addf %171, %172 : vector<16x96xf32>
    %174 = vector.extract_strided_slice %173 {offsets = [0, 0], sizes = [8, 96], strides = [1, 1]} : vector<16x96xf32> to vector<8x96xf32>
    %175 = vector.extract_strided_slice %174 {offsets = [0, 0], sizes = [8, 32], strides = [1, 1]} : vector<8x96xf32> to vector<8x32xf32>
    %cst_90 = arith.constant 0.353553385 : f32
    %176 = vector.broadcast %cst_90 : f32 to vector<8x32xf32>
    %177 = arith.mulf %175, %176 : vector<8x32xf32>
    %178 = vector.extract_strided_slice %174 {offsets = [0, 32], sizes = [8, 32], strides = [1, 1]} : vector<8x96xf32> to vector<8x32xf32>
    %179 = vector.extract_strided_slice %174 {offsets = [0, 64], sizes = [8, 32], strides = [1, 1]} : vector<8x96xf32> to vector<8x32xf32>
    %180 = tpu.concatenate %178, %178, %178, %178 in 0 : vector<8x32xf32>, vector<8x32xf32>, vector<8x32xf32>, vector<8x32xf32> -> vector<32x32xf32>
    %181 = arith.mulf %180, %0 : vector<32x32xf32>
    %182 = tpu.concatenate %179, %179, %179, %179 in 0 : vector<8x32xf32>, vector<8x32xf32>, vector<8x32xf32>, vector<8x32xf32> -> vector<32x32xf32>
    %183 = arith.mulf %182, %0 : vector<32x32xf32>
    "tpu.trace_start"() <{level = 10 : i32, message = "ie,ce->ic"}> : () -> ()
    %cst_91 = arith.constant dense<0.000000e+00> : vector<8x32xf32>
    %184 = tpu.matmul %177, %181, %cst_91 {dimension_numbers = #tpu.dot_dimension_numbers<[1], [1], [0], [0], [0, 0, 1, 0], [], []>} : vector<8x32xf32>, vector<32x32xf32>, vector<8x32xf32> -> vector<8x32xf32>
    "tpu.trace_stop"() : () -> ()
    %185 = vector.broadcast %1 : vector<1x32xf32> to vector<8x32xf32>
    %186 = arith.addf %184, %185 : vector<8x32xf32>
    %cst_92 = arith.constant dense<0xFF800000> : vector<8xf32>
    %187 = vector.multi_reduction <maximumf>, %186, %cst_92 [1] : vector<8x32xf32> to vector<8xf32>
    %188 = vector.shape_cast %187 : vector<8xf32> to vector<8x1xf32>
    %189 = vector.broadcast %188 : vector<8x1xf32> to vector<8x32xf32>
    %190 = arith.subf %186, %189 : vector<8x32xf32>
    %191 = math.exp %190 : vector<8x32xf32>
    %cst_93 = arith.constant dense<0.000000e+00> : vector<8x32xf32>
    %192 = tpu.matmul %191, %183, %cst_93 {dimension_numbers = #tpu.dot_dimension_numbers<[1], [0], [0], [1], [0, 0, 1, 1], [], []>} : vector<8x32xf32>, vector<32x32xf32>, vector<8x32xf32> -> vector<8x32xf32>
    %cst_94 = arith.constant dense<0.000000e+00> : vector<8x32xf32>
    %193 = tpu.matmul %191, %0, %cst_94 {dimension_numbers = #tpu.dot_dimension_numbers<[1], [0], [0], [1], [0, 0, 1, 1], [], []>} : vector<8x32xf32>, vector<32x32xf32>, vector<8x32xf32> -> vector<8x32xf32>
    %194 = tpu.reciprocal %193 {approx = true} : vector<8x32xf32> -> vector<8x32xf32>
    %195 = arith.mulf %192, %194 : vector<8x32xf32>
    %196 = vector.extract_strided_slice %173 {offsets = [8, 0], sizes = [8, 96], strides = [1, 1]} : vector<16x96xf32> to vector<8x96xf32>
    %197 = vector.extract_strided_slice %196 {offsets = [0, 0], sizes = [8, 32], strides = [1, 1]} : vector<8x96xf32> to vector<8x32xf32>
    %cst_95 = arith.constant 0.353553385 : f32
    %198 = vector.broadcast %cst_95 : f32 to vector<8x32xf32>
    %199 = arith.mulf %197, %198 : vector<8x32xf32>
    %200 = vector.extract_strided_slice %196 {offsets = [0, 32], sizes = [8, 32], strides = [1, 1]} : vector<8x96xf32> to vector<8x32xf32>
    %201 = vector.extract_strided_slice %196 {offsets = [0, 64], sizes = [8, 32], strides = [1, 1]} : vector<8x96xf32> to vector<8x32xf32>
    %202 = tpu.concatenate %200, %200, %200, %200 in 0 : vector<8x32xf32>, vector<8x32xf32>, vector<8x32xf32>, vector<8x32xf32> -> vector<32x32xf32>
    %203 = arith.mulf %202, %0 : vector<32x32xf32>
    %204 = tpu.concatenate %201, %201, %201, %201 in 0 : vector<8x32xf32>, vector<8x32xf32>, vector<8x32xf32>, vector<8x32xf32> -> vector<32x32xf32>
    %205 = arith.mulf %204, %0 : vector<32x32xf32>
    "tpu.trace_start"() <{level = 10 : i32, message = "ie,ce->ic"}> : () -> ()
    %cst_96 = arith.constant dense<0.000000e+00> : vector<8x32xf32>
    %206 = tpu.matmul %199, %203, %cst_96 {dimension_numbers = #tpu.dot_dimension_numbers<[1], [1], [0], [0], [0, 0, 1, 0], [], []>} : vector<8x32xf32>, vector<32x32xf32>, vector<8x32xf32> -> vector<8x32xf32>
    "tpu.trace_stop"() : () -> ()
    %207 = vector.broadcast %1 : vector<1x32xf32> to vector<8x32xf32>
    %208 = arith.addf %206, %207 : vector<8x32xf32>
    %cst_97 = arith.constant dense<0xFF800000> : vector<8xf32>
    %209 = vector.multi_reduction <maximumf>, %208, %cst_97 [1] : vector<8x32xf32> to vector<8xf32>
    %210 = vector.shape_cast %209 : vector<8xf32> to vector<8x1xf32>
    %211 = vector.broadcast %210 : vector<8x1xf32> to vector<8x32xf32>
    %212 = arith.subf %208, %211 : vector<8x32xf32>
    %213 = math.exp %212 : vector<8x32xf32>
    %cst_98 = arith.constant dense<0.000000e+00> : vector<8x32xf32>
    %214 = tpu.matmul %213, %205, %cst_98 {dimension_numbers = #tpu.dot_dimension_numbers<[1], [0], [0], [1], [0, 0, 1, 1], [], []>} : vector<8x32xf32>, vector<32x32xf32>, vector<8x32xf32> -> vector<8x32xf32>
    %cst_99 = arith.constant dense<0.000000e+00> : vector<8x32xf32>
    %215 = tpu.matmul %213, %0, %cst_99 {dimension_numbers = #tpu.dot_dimension_numbers<[1], [0], [0], [1], [0, 0, 1, 1], [], []>} : vector<8x32xf32>, vector<32x32xf32>, vector<8x32xf32> -> vector<8x32xf32>
    %216 = tpu.reciprocal %215 {approx = true} : vector<8x32xf32> -> vector<8x32xf32>
    %217 = arith.mulf %214, %216 : vector<8x32xf32>
    %218 = tpu.concatenate %195, %217 in 0 : vector<8x32xf32>, vector<8x32xf32> -> vector<16x32xf32>
    %c1_100 = arith.constant 1 : index
    %c0_101 = arith.constant 0 : index
    %c0_102 = arith.constant 0 : index
    %219 = vector.load %arg9[%c1_100, %c0_101, %c0_102] : memref<2x32x32xf32, #tpu.memory_space<vmem>>, vector<1x32x32xf32>
    %220 = vector.shape_cast %219 : vector<1x32x32xf32> to vector<32x32xf32>
    %c1_103 = arith.constant 1 : index
    %c0_104 = arith.constant 0 : index
    %c0_105 = arith.constant 0 : index
    %221 = vector.load %arg10[%c1_103, %c0_104, %c0_105] : memref<2x1x32xf32, #tpu.memory_space<vmem>>, vector<1x1x32xf32>
    %222 = vector.shape_cast %221 : vector<1x1x32xf32> to vector<1x32xf32>
    %cst_106 = arith.constant dense<0.000000e+00> : vector<16x32xf32>
    %223 = tpu.matmul %218, %220, %cst_106 {dimension_numbers = #tpu.dot_dimension_numbers<[1], [0], [0], [1], [0, 0, 1, 1], [], []>} : vector<16x32xf32>, vector<32x32xf32>, vector<16x32xf32> -> vector<16x32xf32>
    %224 = vector.broadcast %222 : vector<1x32xf32> to vector<16x32xf32>
    %225 = arith.addf %223, %224 : vector<16x32xf32>
    %226 = arith.addf %142, %225 : vector<16x32xf32>
    %c1_107 = arith.constant 1 : index
    %c0_108 = arith.constant 0 : index
    %c0_109 = arith.constant 0 : index
    %227 = vector.load %arg11[%c1_107, %c0_108, %c0_109] : memref<2x1x32xf32, #tpu.memory_space<vmem>>, vector<1x1x32xf32>
    %228 = vector.shape_cast %227 : vector<1x1x32xf32> to vector<1x32xf32>
    %c1_110 = arith.constant 1 : index
    %c0_111 = arith.constant 0 : index
    %c0_112 = arith.constant 0 : index
    %229 = vector.load %arg12[%c1_110, %c0_111, %c0_112] : memref<2x1x32xf32, #tpu.memory_space<vmem>>, vector<1x1x32xf32>
    %230 = vector.shape_cast %229 : vector<1x1x32xf32> to vector<1x32xf32>
    %cst_113 = arith.constant dense<0.000000e+00> : vector<16xf32>
    %231 = vector.multi_reduction <add>, %226, %cst_113 [1] : vector<16x32xf32> to vector<16xf32>
    %232 = vector.shape_cast %231 : vector<16xf32> to vector<16x1xf32>
    %cst_114 = arith.constant 3.200000e+01 : f32
    %233 = vector.broadcast %cst_114 : f32 to vector<16x1xf32>
    %234 = arith.divf %232, %233 : vector<16x1xf32>
    %235 = vector.broadcast %234 : vector<16x1xf32> to vector<16x32xf32>
    %236 = arith.subf %226, %235 : vector<16x32xf32>
    %237 = arith.mulf %236, %236 : vector<16x32xf32>
    %cst_115 = arith.constant dense<0.000000e+00> : vector<16xf32>
    %238 = vector.multi_reduction <add>, %237, %cst_115 [1] : vector<16x32xf32> to vector<16xf32>
    %239 = vector.shape_cast %238 : vector<16xf32> to vector<16x1xf32>
    %cst_116 = arith.constant 3.200000e+01 : f32
    %240 = vector.broadcast %cst_116 : f32 to vector<16x1xf32>
    %241 = arith.divf %239, %240 : vector<16x1xf32>
    %cst_117 = arith.constant 9.99999997E-7 : f32
    %242 = vector.broadcast %cst_117 : f32 to vector<16x1xf32>
    %243 = arith.addf %241, %242 : vector<16x1xf32>
    %244 = math.rsqrt %243 : vector<16x1xf32>
    %245 = vector.broadcast %244 : vector<16x1xf32> to vector<16x32xf32>
    %246 = arith.mulf %236, %245 : vector<16x32xf32>
    %247 = vector.broadcast %228 : vector<1x32xf32> to vector<16x32xf32>
    %248 = arith.mulf %246, %247 : vector<16x32xf32>
    %249 = vector.broadcast %230 : vector<1x32xf32> to vector<16x32xf32>
    %250 = arith.addf %248, %249 : vector<16x32xf32>
    %c1_118 = arith.constant 1 : index
    %c0_119 = arith.constant 0 : index
    %c0_120 = arith.constant 0 : index
    %251 = vector.load %arg13[%c1_118, %c0_119, %c0_120] : memref<2x32x64xf32, #tpu.memory_space<vmem>>, vector<1x32x64xf32>
    %252 = vector.shape_cast %251 : vector<1x32x64xf32> to vector<32x64xf32>
    %c1_121 = arith.constant 1 : index
    %c0_122 = arith.constant 0 : index
    %c0_123 = arith.constant 0 : index
    %253 = vector.load %arg14[%c1_121, %c0_122, %c0_123] : memref<2x1x64xf32, #tpu.memory_space<vmem>>, vector<1x1x64xf32>
    %254 = vector.shape_cast %253 : vector<1x1x64xf32> to vector<1x64xf32>
    %cst_124 = arith.constant dense<0.000000e+00> : vector<16x64xf32>
    %255 = tpu.matmul %250, %252, %cst_124 {dimension_numbers = #tpu.dot_dimension_numbers<[1], [0], [0], [1], [0, 0, 1, 1], [], []>} : vector<16x32xf32>, vector<32x64xf32>, vector<16x64xf32> -> vector<16x64xf32>
    %256 = vector.broadcast %254 : vector<1x64xf32> to vector<16x64xf32>
    %257 = arith.addf %255, %256 : vector<16x64xf32>
    %258 = arith.mulf %257, %257 : vector<16x64xf32>
    %259 = arith.mulf %257, %258 : vector<16x64xf32>
    %cst_125 = arith.constant 4.471500e-02 : f32
    %260 = vector.broadcast %cst_125 : f32 to vector<16x64xf32>
    %261 = arith.mulf %260, %259 : vector<16x64xf32>
    %262 = arith.addf %257, %261 : vector<16x64xf32>
    %cst_126 = arith.constant 0.797884583 : f32
    %263 = vector.broadcast %cst_126 : f32 to vector<16x64xf32>
    %264 = arith.mulf %263, %262 : vector<16x64xf32>
    %265 = math.tanh %264 : vector<16x64xf32>
    %cst_127 = arith.constant 1.000000e+00 : f32
    %266 = vector.broadcast %cst_127 : f32 to vector<16x64xf32>
    %267 = arith.addf %266, %265 : vector<16x64xf32>
    %cst_128 = arith.constant 5.000000e-01 : f32
    %268 = vector.broadcast %cst_128 : f32 to vector<16x64xf32>
    %269 = arith.mulf %268, %267 : vector<16x64xf32>
    %270 = arith.mulf %257, %269 : vector<16x64xf32>
    %c1_129 = arith.constant 1 : index
    %c0_130 = arith.constant 0 : index
    %c0_131 = arith.constant 0 : index
    %271 = vector.load %arg15[%c1_129, %c0_130, %c0_131] : memref<2x64x32xf32, #tpu.memory_space<vmem>>, vector<1x64x32xf32>
    %272 = vector.shape_cast %271 : vector<1x64x32xf32> to vector<64x32xf32>
    %c1_132 = arith.constant 1 : index
    %c0_133 = arith.constant 0 : index
    %c0_134 = arith.constant 0 : index
    %273 = vector.load %arg16[%c1_132, %c0_133, %c0_134] : memref<2x1x32xf32, #tpu.memory_space<vmem>>, vector<1x1x32xf32>
    %274 = vector.shape_cast %273 : vector<1x1x32xf32> to vector<1x32xf32>
    %cst_135 = arith.constant dense<0.000000e+00> : vector<16x32xf32>
    %275 = tpu.matmul %270, %272, %cst_135 {dimension_numbers = #tpu.dot_dimension_numbers<[1], [0], [0], [1], [0, 0, 1, 1], [], []>} : vector<16x64xf32>, vector<64x32xf32>, vector<16x32xf32> -> vector<16x32xf32>
    %276 = vector.broadcast %274 : vector<1x32xf32> to vector<16x32xf32>
    %277 = arith.addf %275, %276 : vector<16x32xf32>
    %278 = arith.addf %226, %277 : vector<16x32xf32>
    %279 = vector.extract_strided_slice %278 {offsets = [0, 0], sizes = [1, 32], strides = [1, 1]} : vector<16x32xf32> to vector<1x32xf32>
    %280 = vector.extract_strided_slice %278 {offsets = [8, 0], sizes = [1, 32], strides = [1, 1]} : vector<16x32xf32> to vector<1x32xf32>
    %281 = tpu.concatenate %279, %280 in 0 : vector<1x32xf32>, vector<1x32xf32> -> vector<2x32xf32>
    %c0_136 = arith.constant 0 : index
    %c0_137 = arith.constant 0 : index
    %282 = vector.load %arg17[%c0_136, %c0_137] : memref<1x32xf32, #tpu.memory_space<vmem>>, vector<1x32xf32>
    %c0_138 = arith.constant 0 : index
    %c0_139 = arith.constant 0 : index
    %283 = vector.load %arg18[%c0_138, %c0_139] : memref<1x32xf32, #tpu.memory_space<vmem>>, vector<1x32xf32>
    %cst_140 = arith.constant dense<0.000000e+00> : vector<2xf32>
    %284 = vector.multi_reduction <add>, %281, %cst_140 [1] : vector<2x32xf32> to vector<2xf32>
    %285 = vector.shape_cast %284 : vector<2xf32> to vector<2x1xf32>
    %cst_141 = arith.constant 3.200000e+01 : f32
    %286 = vector.broadcast %cst_141 : f32 to vector<2x1xf32>
    %287 = arith.divf %285, %286 : vector<2x1xf32>
    %288 = vector.broadcast %287 : vector<2x1xf32> to vector<2x32xf32>
    %289 = arith.subf %281, %288 : vector<2x32xf32>
    %290 = arith.mulf %289, %289 : vector<2x32xf32>
    %cst_142 = arith.constant dense<0.000000e+00> : vector<2xf32>
    %291 = vector.multi_reduction <add>, %290, %cst_142 [1] : vector<2x32xf32> to vector<2xf32>
    %292 = vector.shape_cast %291 : vector<2xf32> to vector<2x1xf32>
    %cst_143 = arith.constant 3.200000e+01 : f32
    %293 = vector.broadcast %cst_143 : f32 to vector<2x1xf32>
    %294 = arith.divf %292, %293 : vector<2x1xf32>
    %cst_144 = arith.constant 9.99999997E-7 : f32
    %295 = vector.broadcast %cst_144 : f32 to vector<2x1xf32>
    %296 = arith.addf %294, %295 : vector<2x1xf32>
    %297 = math.rsqrt %296 : vector<2x1xf32>
    %298 = vector.broadcast %297 : vector<2x1xf32> to vector<2x32xf32>
    %299 = arith.mulf %289, %298 : vector<2x32xf32>
    %300 = vector.broadcast %282 : vector<1x32xf32> to vector<2x32xf32>
    %301 = arith.mulf %299, %300 : vector<2x32xf32>
    %302 = vector.broadcast %283 : vector<1x32xf32> to vector<2x32xf32>
    %303 = arith.addf %301, %302 : vector<2x32xf32>
    %c0_145 = arith.constant 0 : index
    %c0_146 = arith.constant 0 : index
    %304 = vector.load %arg19[%c0_145, %c0_146] : memref<32x64xf32, #tpu.memory_space<vmem>>, vector<32x64xf32>
    %c0_147 = arith.constant 0 : index
    %c0_148 = arith.constant 0 : index
    %305 = vector.load %arg20[%c0_147, %c0_148] : memref<1x64xf32, #tpu.memory_space<vmem>>, vector<1x64xf32>
    %cst_149 = arith.constant dense<0.000000e+00> : vector<2x64xf32>
    %306 = tpu.matmul %303, %304, %cst_149 {dimension_numbers = #tpu.dot_dimension_numbers<[1], [0], [0], [1], [0, 0, 1, 1], [], []>} : vector<2x32xf32>, vector<32x64xf32>, vector<2x64xf32> -> vector<2x64xf32>
    %307 = vector.broadcast %305 : vector<1x64xf32> to vector<2x64xf32>
    %308 = arith.addf %306, %307 : vector<2x64xf32>
    %309 = arith.mulf %308, %308 : vector<2x64xf32>
    %310 = arith.mulf %308, %309 : vector<2x64xf32>
    %cst_150 = arith.constant 4.471500e-02 : f32
    %311 = vector.broadcast %cst_150 : f32 to vector<2x64xf32>
    %312 = arith.mulf %311, %310 : vector<2x64xf32>
    %313 = arith.addf %308, %312 : vector<2x64xf32>
    %cst_151 = arith.constant 0.797884583 : f32
    %314 = vector.broadcast %cst_151 : f32 to vector<2x64xf32>
    %315 = arith.mulf %314, %313 : vector<2x64xf32>
    %316 = math.tanh %315 : vector<2x64xf32>
    %cst_152 = arith.constant 1.000000e+00 : f32
    %317 = vector.broadcast %cst_152 : f32 to vector<2x64xf32>
    %318 = arith.addf %317, %316 : vector<2x64xf32>
    %cst_153 = arith.constant 5.000000e-01 : f32
    %319 = vector.broadcast %cst_153 : f32 to vector<2x64xf32>
    %320 = arith.mulf %319, %318 : vector<2x64xf32>
    %321 = arith.mulf %308, %320 : vector<2x64xf32>
    %c0_154 = arith.constant 0 : index
    %c0_155 = arith.constant 0 : index
    %322 = vector.load %arg21[%c0_154, %c0_155] : memref<64x64xf32, #tpu.memory_space<vmem>>, vector<64x64xf32>
    %c0_156 = arith.constant 0 : index
    %c0_157 = arith.constant 0 : index
    %323 = vector.load %arg22[%c0_156, %c0_157] : memref<1x64xf32, #tpu.memory_space<vmem>>, vector<1x64xf32>
    %cst_158 = arith.constant dense<0.000000e+00> : vector<2x64xf32>
    %324 = tpu.matmul %321, %322, %cst_158 {dimension_numbers = #tpu.dot_dimension_numbers<[1], [0], [0], [1], [0, 0, 1, 1], [], []>} : vector<2x64xf32>, vector<64x64xf32>, vector<2x64xf32> -> vector<2x64xf32>
    %325 = vector.broadcast %323 : vector<1x64xf32> to vector<2x64xf32>
    %326 = arith.addf %324, %325 : vector<2x64xf32>
    %327 = arith.mulf %326, %326 : vector<2x64xf32>
    %328 = arith.mulf %326, %327 : vector<2x64xf32>
    %cst_159 = arith.constant 4.471500e-02 : f32
    %329 = vector.broadcast %cst_159 : f32 to vector<2x64xf32>
    %330 = arith.mulf %329, %328 : vector<2x64xf32>
    %331 = arith.addf %326, %330 : vector<2x64xf32>
    %cst_160 = arith.constant 0.797884583 : f32
    %332 = vector.broadcast %cst_160 : f32 to vector<2x64xf32>
    %333 = arith.mulf %332, %331 : vector<2x64xf32>
    %334 = math.tanh %333 : vector<2x64xf32>
    %cst_161 = arith.constant 1.000000e+00 : f32
    %335 = vector.broadcast %cst_161 : f32 to vector<2x64xf32>
    %336 = arith.addf %335, %334 : vector<2x64xf32>
    %cst_162 = arith.constant 5.000000e-01 : f32
    %337 = vector.broadcast %cst_162 : f32 to vector<2x64xf32>
    %338 = arith.mulf %337, %336 : vector<2x64xf32>
    %339 = arith.mulf %326, %338 : vector<2x64xf32>
    %c0_163 = arith.constant 0 : index
    %c0_164 = arith.constant 0 : index
    %340 = vector.load %arg23[%c0_163, %c0_164] : memref<64x32xf32, #tpu.memory_space<vmem>>, vector<64x32xf32>
    %c0_165 = arith.constant 0 : index
    %c0_166 = arith.constant 0 : index
    %341 = vector.load %arg24[%c0_165, %c0_166] : memref<1x32xf32, #tpu.memory_space<vmem>>, vector<1x32xf32>
    %cst_167 = arith.constant dense<0.000000e+00> : vector<2x32xf32>
    %342 = tpu.matmul %339, %340, %cst_167 {dimension_numbers = #tpu.dot_dimension_numbers<[1], [0], [0], [1], [0, 0, 1, 1], [], []>} : vector<2x64xf32>, vector<64x32xf32>, vector<2x32xf32> -> vector<2x32xf32>
    %343 = vector.broadcast %341 : vector<1x32xf32> to vector<2x32xf32>
    %344 = arith.addf %342, %343 : vector<2x32xf32>
    %345 = arith.mulf %344, %344 : vector<2x32xf32>
    %cst_168 = arith.constant dense<0.000000e+00> : vector<2xf32>
    %346 = vector.multi_reduction <add>, %345, %cst_168 [1] : vector<2x32xf32> to vector<2xf32>
    %347 = vector.shape_cast %346 : vector<2xf32> to vector<2x1xf32>
    %348 = math.sqrt %347 : vector<2x1xf32>
    %cst_169 = arith.constant 9.99999996E-13 : f32
    %349 = vector.broadcast %cst_169 : f32 to vector<2x1xf32>
    %350 = arith.maximumf %348, %349 : vector<2x1xf32>
    %351 = vector.broadcast %350 : vector<2x1xf32> to vector<2x32xf32>
    %352 = arith.divf %344, %351 : vector<2x32xf32>
    %c0_170 = arith.constant 0 : index
    %c0_171 = arith.constant 0 : index
    %353 = vector.load %arg25[%c0_170, %c0_171] : memref<32x64xf32, #tpu.memory_space<vmem>>, vector<32x64xf32>
    %cst_172 = arith.constant dense<0.000000e+00> : vector<2x64xf32>
    %354 = tpu.matmul %352, %353, %cst_172 {dimension_numbers = #tpu.dot_dimension_numbers<[1], [0], [0], [1], [0, 0, 1, 1], [], []>} : vector<2x32xf32>, vector<32x64xf32>, vector<2x64xf32> -> vector<2x64xf32>
    %c0_173 = arith.constant 0 : index
    %c0_174 = arith.constant 0 : index
    %355 = vector.load %arg26[%c0_173, %c0_174] : memref<2x64xf32, #tpu.memory_space<vmem>>, vector<2x64xf32>
    tpu.vector_store %arg26[%c0_173, %c0_174], %354 {strides = array<i32>} : memref<2x64xf32, #tpu.memory_space<vmem>>, vector<2x64xf32>,
    return
  }
}

</mosaic_0001>

<bundles_post_ra>
// kernel: backbone_head_wrapper_forward.1
= control target key start
LH: loop header
LB: loop body
LE: loop exit
PB: predicated region body
PF: predicated region fallthrough
CT: control target
= control target key end

     0   :  { %s4374_s0 = inlined_call_operand.vmem [shape: f32[16,258], index: 0, kind: input, shape index: {}]   ;;  %s4375_s1 = inlined_call_operand.vmem [shape: f32[258,32], index: 1, kind: input, shape index: {}]   ;;  %s4376_s2 = inlined_call_operand.vmem [shape: f32[16,32], index: 2, kind: input, shape index: {}]   ;;  %s4377_s3 = inlined_call_operand.vmem [shape: f32[32,32], index: 3, kind: input, shape index: {}]   ;;  %s4378_s4 = inlined_call_operand.vmem [shape: f32[1,32], index: 4, kind: input, shape index: {}]   ;;  %s4379_s5 = inlined_call_operand.vmem [shape: f32[2,1,32], index: 5, kind: input, shape index: {}]   ;;  %s4380_s6 = inlined_call_operand.vmem [shape: f32[2,1,32], index: 6, kind: input, shape index: {}]   ;;  %s4381_s7 = inlined_call_operand.vmem [shape: f32[2,32,96], index: 7, kind: input, shape index: {}]   ;;  %s4382_s8 = inlined_call_operand.vmem [shape: f32[2,1,96], index: 8, kind: input, shape index: {}]   ;;  %s4383_s9 = inlined_call_operand.vmem [shape: f32[2,32,32], index: 9, kind: input, shape index: {}]   ;;  %s4384_s10 = inlined_call_operand.vmem [shape: f32[2,1,32], index: 10, kind: input, shape index: {}]   ;;  %s4385_s11 = inlined_call_operand.vmem [shape: f32[2,1,32], index: 11, kind: input, shape index: {}]   ;;  %s4386_s12 = inlined_call_operand.vmem [shape: f32[2,1,32], index: 12, kind: input, shape index: {}]   ;;  %s4387_s13 = inlined_call_operand.vmem [shape: f32[2,32,64], index: 13, kind: input, shape index: {}]   ;;  %s4388_s14 = inlined_call_operand.vmem [shape: f32[2,1,64], index: 14, kind: input, shape index: {}]   ;;  %s4389_s15 = inlined_call_operand.vmem [shape: f32[2,64,32], index: 15, kind: input, shape index: {}]   ;;  %s4390_s16 = inlined_call_operand.vmem [shape: f32[2,1,32], index: 16, kind: input, shape index: {}]   ;;  %s4391_s17 = inlined_call_operand.vmem [shape: f32[1,32], index: 17, kind: input, shape index: {}]   ;;  %s4392_s18 = inlined_call_operand.vmem [shape: f32[1,32], index: 18, kind: input, shape index: {}]   ;;  %s4393_s19 = inlined_call_operand.vmem [shape: f32[32,64], index: 19, kind: input, shape index: {}]   ;;  %s4394_s20 = inlined_call_operand.vmem [shape: f32[1,64], index: 20, kind: input, shape index: {}]   ;;  %s4395_s21 = inlined_call_operand.vmem [shape: f32[64,64], index: 21, kind: input, shape index: {}]   ;;  %s4396_s22 = inlined_call_operand.vmem [shape: f32[1,64], index: 22, kind: input, shape index: {}]   ;;  %s4397_s23 = inlined_call_operand.vmem [shape: f32[64,32], index: 23, kind: input, shape index: {}]   ;;  %s4398_s24 = inlined_call_operand.vmem [shape: f32[1,32], index: 24, kind: input, shape index: {}]   ;;  %s4399_s25 = inlined_call_operand.vmem [shape: f32[32,64], index: 25, kind: input, shape index: {}]   ;;  %s4400_s26 = inlined_call_operand.hbm [shape: f32[2,64], index: 26, kind: output, shape index: {}]  }
   0x1   :  { %4413 = sst [smem:[#allocation5_spill]] %s4374_s0 }
   0x2   :  { %4414 = sst [smem:[#allocation6_spill]] %s4375_s1 }
   0x3   :  { %4415 = sst [smem:[#allocation7_spill]] %s4376_s2 }
   0x4   :  { %4416 = sst [smem:[#allocation8_spill]] %s4377_s3 }
   0x5   :  { %4417 = sst [smem:[#allocation9_spill]] %s4378_s4 }
   0x6   :  { %4418 = sst [smem:[#allocation10_spill]] %s4379_s5 }
   0x7   :  { %4419 = sst [smem:[#allocation11_spill]] %s4380_s6 }
   0x8   :  { %4420 = sst [smem:[#allocation12_spill]] %s4381_s7 }
   0x9   :  { %4421 = sst [smem:[#allocation13_spill]] %s4382_s8 }
   0xa   :  { %4422 = sst [smem:[#allocation14_spill]] %s4383_s9 }
   0xb   :  { %4423 = sst [smem:[#allocation15_spill]] %s4384_s10 }
   0xc   :  { %s4424_s7 = sld [smem:[#allocation6_spill]]  ;;  %vm137_vm0 = vcmask 1041408   ;;  %vm130_vm1 = vcmask 15360  }
   0xd   :  { %s4425_s27 = sld [smem:[#allocation5_spill]] }
  0x12   :  { %v126_v0 = vld [vmem:[%s4424_s7 + $0xf8] sm:$0xff]  ;;  %v125_v2 = vld [vmem:[%s4424_s7 + $0xf0] sm:$0xff]  ;;  %v124_v4 = vld [vmem:[%s4424_s7 + $0xe8] sm:$0xff] }
  0x13   :  { %v110_v1 = vld [vmem:[%s4424_s7 + $0x78] sm:$0xff]  ;;  %2901 = vmatprep.subr.mxu0 %v126_v0  ;;  %v109_v3 = vld [vmem:[%s4424_s7 + $0x70] sm:$0xff]  ;;  %v108_v5 = vld [vmem:[%s4424_s7 + $0x68] sm:$0xff] }
  0x14   :  { %2902 = vmatpush3.msra.mxu0 %v110_v1  ;;  %v123_v6 = vld [vmem:[%s4424_s7 + $0xe0] sm:$0xff]  ;;  %v122_v8 = vld [vmem:[%s4424_s7 + $0xd8] sm:$0xff]  ;;  %v121_v10 = vld [vmem:[%s4424_s7 + $0xd0] sm:$0xff] }
  0x15   :  { %2903 = vmatprep.subr.mxu0 %v125_v2  ;;  %v107_v7 = vld [vmem:[%s4424_s7 + $0x60] sm:$0xff]  ;;  %v106_v9 = vld [vmem:[%s4424_s7 + $0x58] sm:$0xff]  ;;  %v105_v11 = vld [vmem:[%s4424_s7 + $0x50] sm:$0xff] }
  0x16   :  { %2904 = vmatpush3.msra.mxu0 %v109_v3  ;;  %v120_v12 = vld [vmem:[%s4424_s7 + $0xc8] sm:$0xff]  ;;  %v127_v15 = vld [vmem:[%s4424_s7 + $0x100] sm:$0x3]  ;;  %v91_v16 = vld [vmem:[%s4425_s27 + $0x10] sm:$0xff] }
  0x17   :  { %2905 = vmatprep.subr.mxu0 %v124_v4  ;;  %v90_v13 = vld [vmem:[%s4425_s27 + $0x8] sm:$0xff]  ;;  %v119_v17 = vld [vmem:[%s4424_s7 + $0xc0] sm:$0xff]  ;;  %3086 = vmatprep.subr.msk.mxu1 %vm137_vm0, %v127_v15 }
  0x18   :  { %2906 = vmatpush3.msra.mxu0 %v108_v5  ;;  %v104_v14 = vld [vmem:[%s4424_s7 + $0x48] sm:$0xff]  ;;  %205 = vmatprep.mubr.f32.mxu0 %v90_v13  ;;  %v103_v19 = vld [vmem:[%s4424_s7 + $0x40] sm:$0xff] }
  0x19   :  { %2907 = vmatprep.subr.mxu0 %v123_v6  ;;  %v94_v18 = vld [vmem:[%s4425_s27 + $0x28] sm:$0xff]  ;;  %3087 = vmatpush3.msk.msra.mxu1 %vm137_vm0, %v127_v15 }
  0x1a   :  { %2908 = vmatpush3.msra.mxu0 %v107_v7 }
  0x1b   :  { %2909 = vmatprep.subr.mxu0 %v122_v8 }
  0x1c   :  { %2910 = vmatpush3.msra.mxu0 %v106_v9 }
  0x1d   :  { %2911 = vmatprep.subr.mxu0 %v121_v10 }
  0x1e   :  { %2912 = vmatpush3.msra.mxu0 %v105_v11 }
  0x1f   :  { %2913 = vmatprep.subr.mxu0 %v120_v12 }
  0x20   :  { %31 = vsyncpa [#allocation3], 0  ;;  %2914 = vmatpush3.msra.mxu0 %v104_v14  ;;  %v118_v20 = vld [vmem:[%s4424_s7 + $0xb8] sm:$0xff]  ;;  %3088 = vmatprep.mubr.msk.f32.mxu1 %vm130_vm1, %v91_v16  ;;  %v117_v22 = vld [vmem:[%s4424_s7 + $0xb0] sm:$0xff]  ;;  %s4426_s1 = sld [smem:[#allocation7_spill]]  ;;  %vm293_vm2 = vcmask 261120  }
  0x21   :  { %2915 = vmatprep.subr.mxu0 %v119_v17  ;;  %v102_v21 = vld [vmem:[%s4424_s7 + $0x38] sm:$0xff]  ;;  %3089 = vmatmul.mubr.msk.f32.vlgmr.msra.gmra.mxu1 %vm130_vm1, %v94_v18  ;;  %v101_v23 = vld [vmem:[%s4424_s7 + $0x30] sm:$0xff]  ;;  %v116_v24 = vld [vmem:[%s4424_s7 + $0xa8] sm:$0xff]  ;;  %s4427_s4 = sld [smem:[#allocation12_spill]]  ;;  %s3465_s28 = smov 32   ;;  %vm3468_vm3 = vmmov 0  }
  0x22   :  { %2916 = vmatpush3.msra.mxu0 %v103_v19  ;;  %v100_v25 = vld [vmem:[%s4424_s7 + $0x28] sm:$0xff]  ;;  %v115_v26 = vld [vmem:[%s4424_s7 + $0xa0] sm:$0xff]  ;;  %v114_v28 = vld [vmem:[%s4424_s7 + $0x98] sm:$0xff]  ;;  %s4428_s6 = sld [smem:[#allocation8_spill]]  ;;  %vm1264_vm4 = vcmask 523264   ;;  %vm2383_vm5 = vcmask 1040384  }
  0x23   :  { %2917 = vmatprep.subr.mxu0 %v118_v20  ;;  %v99_v27 = vld [vmem:[%s4424_s7 + $0x20] sm:$0xff]  ;;  %v98_v29 = vld [vmem:[%s4424_s7 + $0x18] sm:$0xff]  ;;  %v113_v30 = vld [vmem:[%s4424_s7 + $0x90] sm:$0xff]  ;;  %s4429_s2 = sld [smem:[#allocation10_spill]]  ;;  %vm2387_vm6 = vcmask 254976   ;;  %vm2784_vm9 = vcmask 517120  }
  0x24   :  { %2918 = vmatpush3.msra.mxu0 %v102_v21  ;;  %v97_v31 = vld [vmem:[%s4424_s7 + $0x10] sm:$0xff]  ;;  %v112_v32 = vld [vmem:[%s4424_s7 + $0x88] sm:$0xff]  ;;  %v111_v34 = vld [vmem:[%s4424_s7 + $0x80] sm:$0xff]  ;;  %s4431_s3 = sld [smem:[#allocation13_spill]] }
  0x25   :  { %2919 = vmatprep.subr.mxu0 %v117_v22  ;;  %v96_v33 = vld [vmem:[%s4424_s7 + $0x8] sm:$0xff]  ;;  %v95_v35 = vld [vmem:[%s4424_s7] sm:$0xff]  ;;  %v92_v38 = vld [vmem:[%s4425_s27 + $0x18] sm:$0xff]  ;;  %s4430_s7 = sld [smem:[#allocation11_spill]] }
  0x26   :  { %2920 = vmatpush3.msra.mxu0 %v101_v23  ;;  %v89_v36 = vld [vmem:[%s4425_s27] sm:$0xff]  ;;  %v129_v47 = vld [vmem:[%s4426_s1 + $0x8] sm:$0xff]  ;;  %s4432_s0 = sld [smem:[#allocation9_spill]] }
  0x27   :  { %2921 = vmatprep.subr.mxu0 %v116_v24  ;;  %v93_v37 = vld [vmem:[%s4425_s27 + $0x20] sm:$0xff]  ;;  %v340_v1 = vld [vmem:[%s4427_s4 + $0x18] sm:$0xff]  ;;  %v339_v2 = vld [vmem:[%s4427_s4 + $0x10] sm:$0xff]  ;;  %s4411_s27 = smov 64   ;;  %s4433_s5 = sld [smem:[#allocation14_spill]] }
  0x28   :  { %2922 = vmatpush3.msra.mxu0 %v100_v25  ;;  %v128_v42 = vld [vmem:[%s4426_s1] sm:$0xff]  ;;  %3091 = vmatprep.subr.mxu1 %v340_v1  ;;  %v338_v3 = vld [vmem:[%s4427_s4 + $0x8] sm:$0xff]  ;;  %v3758_v5 = vld [vmem:[%s4428_s6 + $0x10] sm:$0xff]  ;;  %v3466_v25 = vmov 0.0   ;;  %s4434_s10 = sld [smem:[#allocation15_spill]] }
  0x29   :  { %2923 = vmatprep.subr.mxu0 %v115_v26  ;;  %3092 = vmatpush3.msra.mxu1 %v340_v1  ;;  %v337_v4 = vld [vmem:[%s4427_s4] sm:$0xff]  ;;  %v3763_v6 = vld [vmem:[%s4428_s6 + $0x18] sm:$0xff]  ;;  %v3770_v7 = vld [vmem:[%s4428_s6 + $0x8] sm:$0xff] }
  0x2a   :  { %2924 = vmatpush3.msra.mxu0 %v99_v27  ;;  %3093 = vmatprep.subr.mxu1 %v339_v2  ;;  %v3776_v8 = vld [vmem:[%s4428_s6] sm:$0xff] }
  0x2b   :  { %2925 = vmatprep.subr.mxu0 %v114_v28  ;;  %3094 = vmatpush3.msra.mxu1 %v339_v2  ;;  %v2803_v16 = vld [vmem:[%s4429_s2] ss:$0 sm:$0xff] }
  0x2c   :  { %2926 = vmatpush3.msra.mxu0 %v98_v29  ;;  %3095 = vmatprep.subr.mxu1 %v338_v3  ;;  %v2804_v18 = vld [vmem:[%s4430_s7] ss:$0 sm:$0xff] }
  0x2d   :  { %2927 = vmatprep.subr.mxu0 %v113_v30  ;;  %3096 = vmatpush3.msra.mxu1 %v338_v3  ;;  %v2805_v27 = vld [vmem:[%s4431_s3] ss:$0 sm:$0xff] }
  0x2e   :  { %2928 = vmatpush3.msra.mxu0 %v97_v31  ;;  %3097 = vmatprep.subr.mxu1 %v337_v4 }
  0x2f   :  { %2929 = vmatprep.subr.mxu0 %v112_v32  ;;  %3098 = vmatpush3.msra.mxu1 %v337_v4 }
  0x30   :  { %2930 = vmatpush3.msra.mxu0 %v96_v33  ;;  %3102 = vmatprep.subr.mxu1 %v3466_v25 }
  0x31   :  { %2931 = vmatprep.subr.mxu0 %v111_v34 }
  0x32   :  { %2932 = vmatpush3.msra.mxu0 %v95_v35 }
  0x33   :  { %206 = vmatmul.mubr.f32.vlgmr.msra.gmra.mxu0 %v89_v36  ;;  %3124 = vmatprep.subr.mxu0 %v3466_v25 }
  0x34   :  { %210 = vmatprep.mubr.f32.mxu0 %v93_v37  ;;  %3125 = vmatpush3.msra.mxu0 %v3763_v6 }
  0x35   :  { %3126 = vmatprep.subr.mxu0 %v3466_v25 }
  0x36   :  { %3127 = vmatpush3.msra.mxu0 %v3758_v5 }
  0x37   :  { %211 = vmatmul.mubr.f32.gmra.mxu0 %v92_v38  ;;  %3128 = vmatprep.subr.mxu0 %v3466_v25 }
  0x38   :  { %3129 = vmatpush3.msra.mxu0 %v3770_v7  ;;  %3132 = vmatprep.mubr.msk.f32.mxu0 %vm3468_vm3, %v3466_v25 }
  0x39   :  { %3130 = vmatprep.subr.mxu0 %v3466_v25 }
  0x3a   :  { %3131 = vmatpush3.msra.mxu0 %v3776_v8 }
  0x3b   :  { %3146 = vmatprep.subr.mxu0 %v3466_v25 }
  0xe1   :  { %v3090_v41 = vpop.f32.mrf.mxu1 }
  0xe3   :  { %v282_v46 = vpop.f32.mrf.mxu1 }
  0xf3   :  { %v2933_v39 = vpop.f32.mrf.mxu0 }
  0xf5   :  { %v2934_v40 = vpop.f32.mrf.mxu0 }
  0xf6   :  { %v2935_v43 = vadd.f32 %v2934_v40, %v2933_v39 }
  0xf7   :  { %v2936_v44 = vpop.f32.mrf.mxu0 }
  0xf8   :  { %v208_v45 = vadd.f32 %v2935_v43, %v128_v42 }
  0xf9   :  { %v2937_v48 = vpop.f32.mrf.mxu0 }
  0xfa   :  { %v3731_v49 = vadd.f32 %v282_v46, %v208_v45  ;;  %v2938_v50 = vadd.f32 %v2937_v48, %v2936_v44 }
  0xfc   :  { %v213_v51 = vadd.f32 %v2938_v50, %v129_v47  ;;  %v294_v52 = vsel %vm293_vm2, %v3731_v49, 0.0 }
  0xfd   :  { %295 = vadd.xlane.f32.xlu0 %v294_v52 }
  0xfe   :  { %v3735_v53 = vadd.f32 %v3090_v41, %v213_v51 }
 0x100   :  { %v297_v54 = vsel %vm293_vm2, %v3735_v53, 0.0 }
 0x101   :  { %298 = vadd.xlane.f32.xlu0 %v297_v54 }
 0x117   :  { %440 = vrot.lane.b32.xlu0 %v3763_v6, %s3465_s28 }
 0x186   :  { %v296_v55 = vpop.xlane.xlu0 %295 }
 0x187   :  { %v301_v56 = vmul.f32 0.03125, %v296_v55 }
 0x189   :  { %v303_v57 = vsub.f32 %v3731_v49, %v301_v56 }
 0x18a   :  { %v299_v58 = vpop.xlane.xlu0 %298 }
 0x18b   :  { %v302_v59 = vmul.f32 0.03125, %v299_v58  ;;  %v305_v60 = vmul.f32 %v303_v57, %v303_v57 }
 0x18d   :  { %v304_v61 = vsub.f32 %v3735_v53, %v302_v59  ;;  %v307_v62 = vsel %vm293_vm2, %v305_v60, 0.0 }
 0x18e   :  { %308 = vadd.xlane.f32.xlu1 %v307_v62  ;;  %v3806_v33 = vpop.permute.xlu0 %440 }
 0x18f   :  { %v306_v63 = vmul.f32 %v304_v61, %v304_v61 }
 0x191   :  { %v310_v0 = vsel %vm293_vm2, %v306_v63, 0.0 }
 0x192   :  { %311 = vadd.xlane.f32.xlu1 %v310_v0 }
 0x1a3   :  { %438 = vrot.lane.b32.xlu1 %v3758_v5, %s3465_s28 }
 0x1a7   :  { %436 = vrot.lane.b32.xlu1 %v3770_v7, %s3465_s28 }
 0x1ab   :  { %434 = vrot.lane.b32.xlu1 %v3776_v8, %s3465_s28  ;;  %s3467_s28 = smov 96  }
 0x217   :  { %v309_v9 = vpop.xlane.xlu1 %308 }
 0x218   :  { %v313_v10 = vmul.f32 0.03125, %v309_v9 }
 0x21a   :  { %v315_v11 = vadd.f32 1e-06, %v313_v10 }
 0x21b   :  { %v312_v12 = vpop.xlane.xlu1 %311 }
 0x21c   :  { %3393 = vrsqrt.f32 %v315_v11  ;;  %v314_v13 = vmul.f32 0.03125, %v312_v12 }
 0x21e   :  { %v316_v14 = vadd.f32 1e-06, %v314_v13 }
 0x21f   :  { %v3797_v26 = vpop.permute.xlu1 %438 }
 0x220   :  { %3395 = vrsqrt.f32 %v316_v14 }
 0x223   :  { %v3804_v30 = vpop.permute.xlu1 %436 }
 0x227   :  { %v3812_v36 = vpop.permute.xlu1 %434 }
 0x229   :  { %v3394_v15 = vpop.eup %3393 }
 0x22a   :  { %v319_v17 = vmul.f32 %v3394_v15, %v303_v57 }
 0x22c   :  { %v327_v19 = vmul.f32 %v2803_v16, %v319_v17 }
 0x22d   :  { %v3396_v20 = vpop.eup %3395 }
 0x22e   :  { %v320_v21 = vmul.f32 %v3396_v20, %v304_v61  ;;  %v335_v22 = vadd.f32 %v2804_v18, %v327_v19  ;;  %v3873_v61 = vld [vmem:[%s4432_s0] ss:$0 sm:$0xff] }
 0x230   :  { %v328_v23 = vmul.f32 %v2803_v16, %v320_v21  ;;  %3099 = vmatprep.mubr.msk.f32.mxu1 %vm293_vm2, %v335_v22 }
 0x232   :  { %v336_v24 = vadd.f32 %v2804_v18, %v328_v23 }
 0x234   :  { %3100 = vmatmul.mubr.msk.f32.vlgmr.msra.gmra.mxu1 %vm293_vm2, %v336_v24 }
 0x235   :  { %3110 = vmatprep.mubr.msk.f32.mxu1 %vm3468_vm3, %v3466_v25 }
 0x2f4   :  { %v3101_v28 = vpop.f32.mrf.mxu1 }
 0x2f5   :  { %v3802_v29 = vadd.f32 %v3101_v28, %v2805_v27 }
 0x2f6   :  { %v420_v31 = vpop.f32.mrf.mxu1 }
 0x2f7   :  { %v421_v32 = vadd.f32 %v2805_v27, %v420_v31  ;;  %v736_v54 = vmul.f32 %v3806_v33, %v3802_v29  ;;  %v735_v55 = vmul.f32 %v3797_v26, %v3802_v29  ;;  %v734_v56 = vmul.f32 %v3804_v30, %v3802_v29 }
 0x2f8   :  { %v733_v2 = vmul.f32 %v3812_v36, %v3802_v29  ;;  %v732_v23 = vmul.f32 0.35355338, %v3802_v29 }
 0x2f9   :  { %v449_v34 = vmul.f32 %v3806_v33, %v421_v32  ;;  %v448_v35 = vmul.f32 %v3797_v26, %v421_v32  ;;  %v447_v37 = vmul.f32 %v3804_v30, %v421_v32  ;;  %v446_v38 = vmul.f32 %v3812_v36, %v421_v32 }
 0x2fa   :  { %v429_v48 = vmul.f32 0.35355338, %v421_v32 }
 0x2fb   :  { %482 = vrot.lane.b32.xlu0 %v449_v34, %s3467_s28  ;;  %480 = vrot.lane.b32.xlu1 %v448_v35, %s3467_s28 }
 0x2ff   :  { %478 = vrot.lane.b32.xlu0 %v447_v37, %s3467_s28  ;;  %476 = vrot.lane.b32.xlu1 %v446_v38, %s3467_s28 }
 0x303   :  { %456 = vrot.lane.b32.xlu0 %v3763_v6, %s4411_s27  ;;  %454 = vrot.lane.b32.xlu1 %v3758_v5, %s4411_s27 }
 0x307   :  { %452 = vrot.lane.b32.xlu0 %v3770_v7, %s4411_s27  ;;  %450 = vrot.lane.b32.xlu1 %v3776_v8, %s4411_s27 }
 0x36d   :  { %v483_v39 = vpop.permute.xlu0 %482  ;;  %v481_v40 = vpop.permute.xlu1 %480 }
 0x36e   :  { %3103 = vmatpush3.xpose.msk.msra.mxu1 %vm293_vm2, %v483_v39 }
 0x36f   :  { %3104 = vmatprep.subr.mxu1 %v3466_v25 }
 0x371   :  { %v479_v41 = vpop.permute.xlu0 %478  ;;  %v477_v42 = vpop.permute.xlu1 %476 }
 0x372   :  { %3105 = vmatpush3.xpose.msk.msra.mxu1 %vm293_vm2, %v481_v40 }
 0x373   :  { %3106 = vmatprep.subr.mxu1 %v3466_v25 }
 0x375   :  { %v3834_v43 = vpop.permute.xlu0 %456  ;;  %v3838_v45 = vpop.permute.xlu1 %454 }
 0x376   :  { %3107 = vmatpush3.xpose.msk.msra.mxu1 %vm293_vm2, %v479_v41  ;;  %v465_v44 = vmul.f32 %v3834_v43, %v421_v32  ;;  %v464_v46 = vmul.f32 %v3838_v45, %v421_v32  ;;  %v740_v3 = vmul.f32 %v3834_v43, %v3802_v29  ;;  %v739_v4 = vmul.f32 %v3838_v45, %v3802_v29 }
 0x377   :  { %3108 = vmatprep.subr.mxu1 %v3466_v25 }
 0x378   :  { %581 = vrot.lane.b32.xlu1 %v465_v44, %s4411_s27  ;;  %v1004_v44 = vld [vmem:[%s4433_s5 + $0x18] sm:$0xff] }
 0x379   :  { %v3844_v47 = vpop.permute.xlu0 %452  ;;  %v3852_v51 = vpop.permute.xlu1 %450 }
 0x37a   :  { %3109 = vmatpush3.xpose.msk.msra.mxu1 %vm293_vm2, %v477_v42  ;;  %v463_v50 = vmul.f32 %v3844_v47, %v421_v32  ;;  %v462_v52 = vmul.f32 %v3852_v51, %v421_v32  ;;  %v738_v9 = vmul.f32 %v3844_v47, %v3802_v29  ;;  %v737_v10 = vmul.f32 %v3852_v51, %v3802_v29 }
 0x37b   :  { %3113 = vmatprep.subr.mxu1 %v3466_v25 }
 0x37c   :  { %579 = vrot.lane.b32.xlu1 %v464_v46, %s4411_s27  ;;  %v1003_v46 = vld [vmem:[%s4433_s5 + $0x10] sm:$0xff] }
 0x37d   :  { %3111 = vmatmul.mubr.msk.f32.vlgmr.msra.gmra.mxu1 %vm293_vm2, %v429_v48  ;;  %v1002_v48 = vld [vmem:[%s4433_s5 + $0x8] sm:$0xff] }
 0x37e   :  { %3121 = vmatprep.mubr.msk.f32.mxu1 %vm3468_vm3, %v3466_v25 }
 0x380   :  { %577 = vrot.lane.b32.xlu1 %v463_v50, %s4411_s27  ;;  %v1001_v50 = vld [vmem:[%s4433_s5] sm:$0xff] }
 0x384   :  { %575 = vrot.lane.b32.xlu1 %v462_v52, %s4411_s27 }
 0x388   :  { %751 = vrot.lane.b32.xlu1 %v736_v54, %s3467_s28 }
 0x38c   :  { %749 = vrot.lane.b32.xlu1 %v735_v55, %s3467_s28 }
 0x390   :  { %747 = vrot.lane.b32.xlu1 %v734_v56, %s3467_s28 }
 0x3ea   :  { %v582_v57 = vpop.permute.xlu1 %581 }
 0x3eb   :  { %3114 = vmatpush3.msra.mxu1 %v582_v57 }
 0x3ec   :  { %3115 = vmatprep.subr.mxu1 %v3466_v25 }
 0x3ee   :  { %v580_v58 = vpop.permute.xlu1 %579 }
 0x3ef   :  { %3116 = vmatpush3.msra.mxu1 %v580_v58 }
 0x3f0   :  { %3117 = vmatprep.subr.mxu1 %v3466_v25 }
 0x3f2   :  { %v578_v59 = vpop.permute.xlu1 %577 }
 0x3f3   :  { %3118 = vmatpush3.msra.mxu1 %v578_v59  ;;  %v2823_v59 = vld [vmem:[%s4434_s10] ss:$0 sm:$0xff] }
 0x3f4   :  { %3119 = vmatprep.subr.mxu1 %v3466_v25 }
 0x3f6   :  { %v576_v60 = vpop.permute.xlu1 %575 }
 0x3f7   :  { %3120 = vmatpush3.msra.mxu1 %v576_v60 }
 0x3f8   :  { %3135 = vmatprep.subr.mxu1 %v3466_v25 }
 0x3fa   :  { %v752_v17 = vpop.permute.xlu1 %751 }
 0x3fe   :  { %v750_v20 = vpop.permute.xlu1 %749 }
 0x402   :  { %v748_v22 = vpop.permute.xlu1 %747 }
 0x43d   :  { %v561_v62 = vpop.f32.mrf.mxu1 }
 0x43e   :  { %v562_v63 = vadd.f32 %v3873_v61, %v561_v62 }
 0x43f   :  { %v3112_v0 = vpop.f32.mrf.mxu1 }
 0x440   :  { %v565_v1 = vsel %vm293_vm2, %v562_v63, -inf }
 0x441   :  { %566 = vmax.xlane.f32.xlu0 %v565_v1 }
 0x457   :  { %745 = vrot.lane.b32.xlu0 %v733_v2, %s3467_s28 }
 0x45b   :  { %850 = vrot.lane.b32.xlu0 %v740_v3, %s4411_s27 }
 0x45f   :  { %848 = vrot.lane.b32.xlu0 %v739_v4, %s4411_s27 }
 0x463   :  { %846 = vrot.lane.b32.xlu0 %v738_v9, %s4411_s27 }
 0x467   :  { %844 = vrot.lane.b32.xlu0 %v737_v10, %s4411_s27 }
 0x4ca   :  { %v567_v11 = vpop.xlane.xlu0 %566 }
 0x4cb   :  { %v568_v12 = vsub.f32 %v562_v63, %v567_v11 }
 0x4cd   :  { %v569_v13 = vmul.f32 1.442695, %v568_v12 }
 0x4ce   :  { %v746_v14 = vpop.permute.xlu0 %745 }
 0x4cf   :  { %3397 = vpow2.f32 %v569_v13 }
 0x4d2   :  { %v851_v15 = vpop.permute.xlu0 %850 }
 0x4d6   :  { %v849_v16 = vpop.permute.xlu0 %848 }
 0x4da   :  { %v847_v19 = vpop.permute.xlu0 %846 }
 0x4dc   :  { %v3398_v18 = vpop.eup %3397 }
 0x4dd   :  { %3122 = vmatmul.mubr.msk.f32.vlgmr.msra.gmra.mxu1 %vm293_vm2, %v3398_v18  ;;  %3133 = vmatmul.mubr.msk.f32.vlgmr.msra.gmra.mxu0 %vm293_vm2, %v3398_v18  ;;  %v1141_v18 = vld [vmem:[%s4387_s13 + $0x10] sm:$0xff] }
 0x4de   :  { %3136 = vmatpush3.xpose.msk.msra.mxu1 %vm293_vm2, %v752_v17  ;;  %3147 = vmatpush3.msra.mxu0 %v851_v15  ;;  %v845_v21 = vpop.permute.xlu0 %844  ;;  %v1142_v17 = vld [vmem:[%s4387_s13 + $0x18] sm:$0xff] }
 0x4df   :  { %3148 = vmatprep.subr.mxu0 %v3466_v25  ;;  %3137 = vmatprep.subr.mxu1 %v3466_v25 }
 0x4e0   :  { %3149 = vmatpush3.msra.mxu0 %v849_v16  ;;  %3143 = vmatprep.mubr.msk.f32.mxu1 %vm3468_vm3, %v3466_v25 }
 0x4e1   :  { %3150 = vmatprep.subr.mxu0 %v3466_v25  ;;  %3154 = vmatprep.mubr.msk.f32.mxu0 %vm3468_vm3, %v3466_v25 }
 0x4e2   :  { %3138 = vmatpush3.xpose.msk.msra.mxu1 %vm293_vm2, %v750_v20  ;;  %3151 = vmatpush3.msra.mxu0 %v847_v19  ;;  %v1140_v19 = vld [vmem:[%s4387_s13 + $0x8] sm:$0xff]  ;;  %v1139_v20 = vld [vmem:[%s4387_s13] sm:$0xff] }
 0x4e3   :  { %3152 = vmatprep.subr.mxu0 %v3466_v25  ;;  %3139 = vmatprep.subr.mxu1 %v3466_v25 }
 0x4e4   :  { %3153 = vmatpush3.msra.mxu0 %v845_v21 }
 0x4e5   :  { %3157 = vmatprep.subr.mxu0 %v3466_v25 }
 0x4e6   :  { %3140 = vmatpush3.xpose.msk.msra.mxu1 %vm293_vm2, %v748_v22 }
 0x4e7   :  { %3141 = vmatprep.subr.mxu1 %v3466_v25 }
 0x4ea   :  { %3142 = vmatpush3.xpose.msk.msra.mxu1 %vm293_vm2, %v746_v14 }
 0x4eb   :  { %3168 = vmatprep.subr.mxu1 %v1004_v44 }
 0x4ed   :  { %3144 = vmatmul.mubr.msk.f32.vlgmr.msra.gmra.mxu1 %vm293_vm2, %v732_v23 }
 0x4ee   :  { %3169 = vmatpush3.msra.mxu1 %v1004_v44  ;;  %v1255_v44 = vld [vmem:[%s4389_s15 + $0x30] sm:$0xff] }
 0x4ef   :  { %3170 = vmatprep.subr.mxu1 %v1003_v46 }
 0x4f0   :  { %3171 = vmatpush3.msra.mxu1 %v1003_v46  ;;  %v1254_v46 = vld [vmem:[%s4389_s15 + $0x28] sm:$0xff] }
 0x4f1   :  { %3172 = vmatprep.subr.mxu1 %v1002_v48 }
 0x4f2   :  { %3173 = vmatpush3.msra.mxu1 %v1002_v48  ;;  %v1253_v48 = vld [vmem:[%s4389_s15 + $0x20] sm:$0xff] }
 0x4f3   :  { %3174 = vmatprep.subr.mxu1 %v1001_v50 }
 0x4f4   :  { %3175 = vmatpush3.msra.mxu1 %v1001_v50  ;;  %v1252_v50 = vld [vmem:[%s4389_s15 + $0x18] sm:$0xff] }
 0x59d   :  { %v656_v24 = vpop.f32.mrf.mxu1  ;;  %v726_v27 = vpop.f32.mrf.mxu0 }
 0x59e   :  { %3399 = vrcp.f32 %v726_v27 }
 0x59f   :  { %v3123_v28 = vpop.f32.mrf.mxu1  ;;  %v3134_v31 = vpop.f32.mrf.mxu0 }
 0x5ab   :  { %v3400_v32 = vpop.eup %3399 }
 0x5ac   :  { %v731_v34 = vmul.f32 %v3400_v32, %v656_v24  ;;  %v2826_v32 = vld [vmem:[%s4385_s11] ss:$0 sm:$0xff] }
 0x5ad   :  { %v830_v35 = vpop.f32.mrf.mxu1 }
 0x5ae   :  { %v831_v37 = vadd.f32 %v3873_v61, %v830_v35  ;;  %3176 = vmatprep.mubr.msk.f32.mxu1 %vm293_vm2, %v731_v34  ;;  %v2827_v35 = vld [vmem:[%s4386_s12] ss:$0 sm:$0xff] }
 0x5af   :  { %v3145_v38 = vpop.f32.mrf.mxu1 }
 0x5b0   :  { %v834_v39 = vsel %vm293_vm2, %v831_v37, -inf }
 0x5b1   :  { %835 = vmax.xlane.f32.xlu1 %v834_v39 }
 0x63a   :  { %v836_v40 = vpop.xlane.xlu1 %835 }
 0x63b   :  { %v837_v29 = vsub.f32 %v831_v37, %v836_v40 }
 0x63d   :  { %v838_v41 = vmul.f32 1.442695, %v837_v29 }
 0x63f   :  { %3401 = vpow2.f32 %v838_v41 }
 0x64c   :  { %v3402_v42 = vpop.eup %3401 }
 0x64d   :  { %3155 = vmatmul.mubr.msk.f32.vlgmr.msra.gmra.mxu0 %vm293_vm2, %v3402_v42 }
 0x64e   :  { %3158 = vmatpush3.msra.mxu0 %v3763_v6  ;;  %3165 = vmatprep.mubr.msk.f32.mxu0 %vm3468_vm3, %v3466_v25 }
 0x64f   :  { %3159 = vmatprep.subr.mxu0 %v3466_v25 }
 0x650   :  { %3160 = vmatpush3.msra.mxu0 %v3758_v5 }
 0x651   :  { %3161 = vmatprep.subr.mxu0 %v3466_v25 }
 0x652   :  { %3162 = vmatpush3.msra.mxu0 %v3770_v7 }
 0x653   :  { %3163 = vmatprep.subr.mxu0 %v3466_v25 }
 0x654   :  { %3164 = vmatpush3.msra.mxu0 %v3776_v8 }
 0x655   :  { %3166 = vmatmul.mubr.msk.f32.vlgmr.msra.gmra.mxu0 %vm293_vm2, %v3402_v42  ;;  %3179 = vmatprep.subr.mxu0 %v1142_v17  ;;  %v1256_v42 = vld [vmem:[%s4389_s15 + $0x38] sm:$0xff] }
 0x656   :  { %3180 = vmatpush3.msra.mxu0 %v1142_v17  ;;  %3190 = vmatprep.subr.mxu1 %v1256_v42 }
 0x657   :  { %3181 = vmatprep.subr.mxu0 %v1141_v18 }
 0x658   :  { %3182 = vmatpush3.msra.mxu0 %v1141_v18 }
 0x659   :  { %3183 = vmatprep.subr.mxu0 %v1140_v19 }
 0x65a   :  { %3184 = vmatpush3.msra.mxu0 %v1140_v19 }
 0x65b   :  { %3185 = vmatprep.subr.mxu0 %v1139_v20 }
 0x65c   :  { %3186 = vmatpush3.msra.mxu0 %v1139_v20 }
 0x70d   :  { %v925_v52 = vpop.f32.mrf.mxu0 }
 0x70f   :  { %v3156_v54 = vpop.f32.mrf.mxu0 }
 0x710   :  { %v1250_v54 = vld [vmem:[%s4389_s15 + $0x8] sm:$0xff] }
 0x715   :  { %v995_v55 = vpop.f32.mrf.mxu0 }
 0x716   :  { %3403 = vrcp.f32 %v995_v55  ;;  %v1249_v55 = vld [vmem:[%s4389_s15] sm:$0xff] }
 0x717   :  { %v3167_v56 = vpop.f32.mrf.mxu0 }
 0x718   :  { %v2828_v56 = vld [vmem:[%s4388_s14] ss:$0 sm:$0xff] }
 0x723   :  { %v3404_v57 = vpop.eup %3403 }
 0x724   :  { %v1000_v58 = vmul.f32 %v3404_v57, %v925_v52  ;;  %v1251_v52 = vld [vmem:[%s4389_s15 + $0x10] sm:$0xff] }
 0x726   :  { %3177 = vmatmul.mubr.msk.f32.vlgmr.msra.gmra.mxu1 %vm293_vm2, %v1000_v58 }
 0x727   :  { %3191 = vmatpush3.msra.mxu1 %v1256_v42  ;;  %v2841_v42 = vld [vmem:[%s4427_s4 + $0x38] sm:$0xff] }
 0x728   :  { %3192 = vmatprep.subr.mxu1 %v1255_v44  ;;  %3209 = vmatprep.subr.mxu0 %v2841_v42 }
 0x729   :  { %3193 = vmatpush3.msra.mxu1 %v1255_v44  ;;  %v2840_v44 = vld [vmem:[%s4427_s4 + $0x30] sm:$0xff] }
 0x72a   :  { %3194 = vmatprep.subr.mxu1 %v1254_v46 }
 0x72b   :  { %3195 = vmatpush3.msra.mxu1 %v1254_v46  ;;  %v2839_v46 = vld [vmem:[%s4427_s4 + $0x28] sm:$0xff] }
 0x72c   :  { %3196 = vmatprep.subr.mxu1 %v1253_v48 }
 0x72d   :  { %3197 = vmatpush3.msra.mxu1 %v1253_v48  ;;  %v2838_v48 = vld [vmem:[%s4427_s4 + $0x20] sm:$0xff] }
 0x72e   :  { %3198 = vmatprep.subr.mxu1 %v1252_v50 }
 0x72f   :  { %3199 = vmatpush3.msra.mxu1 %v1252_v50 }
 0x730   :  { %3200 = vmatprep.subr.mxu1 %v1251_v52 }
 0x731   :  { %3201 = vmatpush3.msra.mxu1 %v1251_v52 }
 0x732   :  { %3202 = vmatprep.subr.mxu1 %v1250_v54 }
 0x733   :  { %3203 = vmatpush3.msra.mxu1 %v1250_v54 }
 0x734   :  { %3204 = vmatprep.subr.mxu1 %v1249_v55 }
 0x735   :  { %3205 = vmatpush3.msra.mxu1 %v1249_v55 }
 0x736   :  { %3231 = vmatprep.subr.mxu1 %v3466_v25 }
 0x7e6   :  { %v3178_v60 = vpop.f32.mrf.mxu1 }
 0x7e7   :  { %v1090_v62 = vadd.f32 %v3178_v60, %v2823_v59 }
 0x7e8   :  { %v1084_v63 = vpop.f32.mrf.mxu1 }
 0x7e9   :  { %v3942_v0 = vadd.f32 %v1090_v62, %v3735_v53  ;;  %v1085_v1 = vadd.f32 %v2823_v59, %v1084_v63 }
 0x7eb   :  { %v3945_v2 = vadd.f32 %v1085_v1, %v3731_v49  ;;  %v1100_v3 = vsel %vm293_vm2, %v3942_v0, 0.0 }
 0x7ec   :  { %1101 = vadd.xlane.f32.xlu0 %v1100_v3 }
 0x7ed   :  { %v1097_v4 = vsel %vm293_vm2, %v3945_v2, 0.0 }
 0x7ee   :  { %1098 = vadd.xlane.f32.xlu1 %v1097_v4 }
 0x875   :  { %v1102_v9 = vpop.xlane.xlu0 %1101 }
 0x876   :  { %v1104_v10 = vmul.f32 0.03125, %v1102_v9 }
 0x877   :  { %v1099_v11 = vpop.xlane.xlu1 %1098 }
 0x878   :  { %v1103_v12 = vmul.f32 0.03125, %v1099_v11  ;;  %v1106_v13 = vsub.f32 %v3942_v0, %v1104_v10 }
 0x87a   :  { %v1105_v53 = vsub.f32 %v3945_v2, %v1103_v12  ;;  %v1108_v15 = vmul.f32 %v1106_v13, %v1106_v13 }
 0x87c   :  { %v1107_v14 = vmul.f32 %v1105_v53, %v1105_v53  ;;  %v1112_v16 = vsel %vm293_vm2, %v1108_v15, 0.0 }
 0x87e   :  { %v1109_v49 = vsel %vm293_vm2, %v1107_v14, 0.0 }
 0x87f   :  { %1110 = vadd.xlane.f32.xlu1 %v1109_v49 }
 0x883   :  { %1113 = vadd.xlane.f32.xlu1 %v1112_v16 }
 0x908   :  { %v1111_v21 = vpop.xlane.xlu1 %1110 }
 0x909   :  { %v1115_v22 = vmul.f32 0.03125, %v1111_v21  ;;  %v2831_v21 = vld [vmem:[%s4390_s16] ss:$0 sm:$0xff] }
 0x90b   :  { %v1117_v23 = vadd.f32 1e-06, %v1115_v22 }
 0x90c   :  { %v1114_v24 = vpop.xlane.xlu1 %1113 }
 0x90d   :  { %3405 = vrsqrt.f32 %v1117_v23  ;;  %v1116_v27 = vmul.f32 0.03125, %v1114_v24 }
 0x90f   :  { %v1118_v28 = vadd.f32 1e-06, %v1116_v27 }
 0x911   :  { %3407 = vrsqrt.f32 %v1118_v28 }
 0x91a   :  { %v3406_v31 = vpop.eup %3405 }
 0x91b   :  { %v1121_v34 = vmul.f32 %v3406_v31, %v1105_v53 }
 0x91d   :  { %v1129_v37 = vmul.f32 %v2826_v32, %v1121_v34 }
 0x91e   :  { %v3408_v38 = vpop.eup %3407 }
 0x91f   :  { %v1122_v39 = vmul.f32 %v3408_v38, %v1106_v13  ;;  %v1137_v40 = vadd.f32 %v2827_v35, %v1129_v37 }
 0x921   :  { %v1130_v29 = vmul.f32 %v2826_v32, %v1122_v39  ;;  %3187 = vmatprep.mubr.msk.f32.mxu0 %vm293_vm2, %v1137_v40 }
 0x923   :  { %v1138_v41 = vadd.f32 %v2827_v35, %v1130_v29 }
 0x925   :  { %3188 = vmatmul.mubr.msk.f32.vlgmr.msra.gmra.mxu0 %vm293_vm2, %v1138_v41 }
 0x926   :  { %3210 = vmatpush3.msra.mxu0 %v2841_v42 }
 0x927   :  { %3211 = vmatprep.subr.mxu0 %v2840_v44 }
 0x928   :  { %3212 = vmatpush3.msra.mxu0 %v2840_v44 }
 0x929   :  { %3213 = vmatprep.subr.mxu0 %v2839_v46 }
 0x92a   :  { %3214 = vmatpush3.msra.mxu0 %v2839_v46 }
 0x92b   :  { %3215 = vmatprep.subr.mxu0 %v2838_v48 }
 0x92c   :  { %3216 = vmatpush3.msra.mxu0 %v2838_v48 }
 0x92d   :  { %3220 = vmatprep.subr.mxu0 %v3466_v25 }
 0x9e5   :  { %v3189_v57 = vpop.f32.mrf.mxu0 }
 0x9e6   :  { %v1228_v58 = vadd.f32 %v3189_v57, %v2828_v56 }
 0x9e7   :  { %v1222_v59 = vpop.f32.mrf.mxu0 }
 0x9e8   :  { %v1232_v60 = vmul.f32 %v1228_v58, %v1228_v58  ;;  %v1223_v62 = vadd.f32 %v2828_v56, %v1222_v59  ;;  %v2836_v59 = vld [vmem:[%s4429_s2 + $0x1] ss:$0 sm:$0xff] }
 0x9ea   :  { %v1234_v63 = vmul.f32 %v1232_v60, %v1228_v58  ;;  %v1231_v1 = vmul.f32 %v1223_v62, %v1223_v62 }
 0x9ec   :  { %v1236_v3 = vmul.f32 0.044715, %v1234_v63  ;;  %v1233_v4 = vmul.f32 %v1231_v1, %v1223_v62 }
 0x9ee   :  { %v1238_v9 = vadd.f32 %v1236_v3, %v1228_v58  ;;  %v1235_v10 = vmul.f32 0.044715, %v1233_v4 }
 0x9f0   :  { %v1240_v11 = vmul.f32 0.7978846, %v1238_v9  ;;  %v1237_v12 = vadd.f32 %v1235_v10, %v1223_v62 }
 0x9f2   :  { %3409 = vtanh.f32 %v1240_v11  ;;  %v1239_v13 = vmul.f32 0.7978846, %v1237_v12  ;;  %v2843_v12 = vld [vmem:[%s4431_s3 + $0x1] ss:$0 sm:$0xff] }
 0x9f4   :  { %3411 = vtanh.f32 %v1239_v13 }
 0x9ff   :  { %v3410_v53 = vpop.eup %3409 }
 0xa00   :  { %v1244_v14 = vadd.f32 1.0, %v3410_v53 }
 0xa01   :  { %v3412_v49 = vpop.eup %3411 }
 0xa02   :  { %v1243_v15 = vadd.f32 1.0, %v3412_v49  ;;  %v1246_v16 = vmul.f32 0.5, %v1244_v14 }
 0xa04   :  { %v1245_v17 = vmul.f32 0.5, %v1243_v15  ;;  %v1248_v19 = vmul.f32 %v1246_v16, %v1228_v58 }
 0xa06   :  { %v1247_v18 = vmul.f32 %v1245_v17, %v1223_v62  ;;  %v2837_v62 = vld [vmem:[%s4430_s7 + $0x1] ss:$0 sm:$0xff]  ;;  %s4435_s7 = smov 64  }
 0xa08   :  { %3206 = vmatprep.mubr.msk.f32.mxu1 %vm1264_vm4, %v1247_v18 }
 0xa09   :  { %3207 = vmatmul.mubr.msk.f32.vlgmr.msra.gmra.mxu1 %vm1264_vm4, %v1248_v19 }
 0xa0a   :  { %3239 = vmatprep.mubr.msk.f32.mxu1 %vm3468_vm3, %v3466_v25 }
 0xac9   :  { %v3208_v20 = vpop.f32.mrf.mxu1 }
 0xaca   :  { %v1343_v23 = vadd.f32 %v3208_v20, %v2831_v21 }
 0xacb   :  { %v1337_v22 = vpop.f32.mrf.mxu1 }
 0xacc   :  { %v1338_v24 = vadd.f32 %v2831_v21, %v1337_v22  ;;  %v4014_v28 = vadd.f32 %v1343_v23, %v3942_v0 }
 0xace   :  { %v4011_v27 = vadd.f32 %v1338_v24, %v3945_v2  ;;  %v1355_v32 = vsel %vm293_vm2, %v4014_v28, 0.0 }
 0xad0   :  { %v1352_v31 = vsel %vm293_vm2, %v4011_v27, 0.0 }
 0xad1   :  { %1353 = vadd.xlane.f32.xlu1 %v1352_v31 }
 0xad5   :  { %1356 = vadd.xlane.f32.xlu1 %v1355_v32 }
 0xb5a   :  { %v1354_v34 = vpop.xlane.xlu1 %1353 }
 0xb5b   :  { %v1358_v35 = vmul.f32 0.03125, %v1354_v34 }
 0xb5d   :  { %v1360_v37 = vsub.f32 %v4011_v27, %v1358_v35 }
 0xb5e   :  { %v1357_v38 = vpop.xlane.xlu1 %1356 }
 0xb5f   :  { %v1359_v39 = vmul.f32 0.03125, %v1357_v38  ;;  %v1362_v40 = vmul.f32 %v1360_v37, %v1360_v37 }
 0xb61   :  { %v1361_v2 = vsub.f32 %v4014_v28, %v1359_v39  ;;  %v1364_v0 = vsel %vm293_vm2, %v1362_v40, 0.0 }
 0xb62   :  { %1365 = vadd.xlane.f32.xlu1 %v1364_v0 }
 0xb63   :  { %v1363_v29 = vmul.f32 %v1361_v2, %v1361_v2 }
 0xb65   :  { %v1367_v41 = vsel %vm293_vm2, %v1363_v29, 0.0 }
 0xb66   :  { %1368 = vadd.xlane.f32.xlu1 %v1367_v41 }
 0xbeb   :  { %v1366_v50 = vpop.xlane.xlu1 %1365 }
 0xbec   :  { %v1370_v52 = vmul.f32 0.03125, %v1366_v50 }
 0xbee   :  { %v1372_v54 = vadd.f32 1e-06, %v1370_v52 }
 0xbef   :  { %v1369_v55 = vpop.xlane.xlu1 %1368 }
 0xbf0   :  { %3413 = vrsqrt.f32 %v1372_v54  ;;  %v1371_v56 = vmul.f32 0.03125, %v1369_v55 }
 0xbf2   :  { %v1373_v57 = vadd.f32 1e-06, %v1371_v56 }
 0xbf4   :  { %3415 = vrsqrt.f32 %v1373_v57 }
 0xbfd   :  { %v3414_v58 = vpop.eup %3413 }
 0xbfe   :  { %v1376_v60 = vmul.f32 %v3414_v58, %v1360_v37 }
 0xc00   :  { %v1384_v63 = vmul.f32 %v2836_v59, %v1376_v60 }
 0xc01   :  { %v3416_v1 = vpop.eup %3415 }
 0xc02   :  { %v1377_v3 = vmul.f32 %v3416_v1, %v1361_v2  ;;  %v1392_v4 = vadd.f32 %v2837_v62, %v1384_v63 }
 0xc04   :  { %v1385_v9 = vmul.f32 %v2836_v59, %v1377_v3  ;;  %3217 = vmatprep.mubr.msk.f32.mxu0 %vm293_vm2, %v1392_v4 }
 0xc06   :  { %v1393_v10 = vadd.f32 %v2837_v62, %v1385_v9  ;;  %v2862_v9 = vld [vmem:[%s4433_s5 + $0x30] sm:$0xff] }
 0xc08   :  { %3218 = vmatmul.mubr.msk.f32.vlgmr.msra.gmra.mxu0 %vm293_vm2, %v1393_v10 }
 0xc09   :  { %3228 = vmatprep.mubr.msk.f32.mxu0 %vm3468_vm3, %v3466_v25 }
 0xcc8   :  { %v3219_v11 = vpop.f32.mrf.mxu0 }
 0xcc9   :  { %v4052_v14 = vadd.f32 %v3219_v11, %v2843_v12 }
 0xcca   :  { %v1479_v13 = vpop.f32.mrf.mxu0 }
 0xccb   :  { %v4050_v53 = vadd.f32 %v2843_v12, %v1479_v13  ;;  %v1760_v16 = vmul.f32 %v4052_v14, %v3797_v26  ;;  %v1758_v18 = vmul.f32 %v4052_v14, %v3812_v36  ;;  %v1761_v20 = vmul.f32 %v4052_v14, %v3806_v33 }
 0xccc   :  { %v1764_v22 = vmul.f32 %v4052_v14, %v3838_v45  ;;  %v1757_v40 = vmul.f32 0.35355338, %v4052_v14  ;;  %v1765_v52 = vmul.f32 %v4052_v14, %v3834_v43  ;;  %v1763_v54 = vmul.f32 %v4052_v14, %v3844_v47 }
 0xccd   :  { %v1492_v49 = vmul.f32 %v4050_v53, %v3806_v33  ;;  %v1491_v15 = vmul.f32 %v4050_v53, %v3797_v26  ;;  %v1490_v17 = vmul.f32 %v4050_v53, %v3804_v30  ;;  %v1489_v19 = vmul.f32 %v4050_v53, %v3812_v36 }
 0xcce   :  { %v1496_v26 = vmul.f32 %v4050_v53, %v3834_v43  ;;  %v1493_v21 = vmul.f32 %v4050_v53, %v3852_v51  ;;  %v1759_v36 = vmul.f32 %v4052_v14, %v3804_v30  ;;  %v1495_v33 = vmul.f32 %v4050_v53, %v3838_v45 }
 0xccf   :  { %1507 = vrot.lane.b32.xlu1 %v1492_v49, %s3467_s28  ;;  %1505 = vrot.lane.b32.xlu0 %v1491_v15, %s3467_s28  ;;  %v1488_v37 = vmul.f32 0.35355338, %v4050_v53  ;;  %v1494_v50 = vmul.f32 %v4050_v53, %v3844_v47 }
 0xcd3   :  { %1774 = vrot.lane.b32.xlu0 %v1760_v16, %s3467_s28  ;;  %1503 = vrot.lane.b32.xlu1 %v1490_v17, %s3467_s28 }
 0xcd7   :  { %1770 = vrot.lane.b32.xlu0 %v1758_v18, %s3467_s28  ;;  %1501 = vrot.lane.b32.xlu1 %v1489_v19, %s3467_s28  ;;  %v2865_v19 = vld [vmem:[%s4434_s10 + $0x1] ss:$0 sm:$0xff] }
 0xcdb   :  { %1606 = vrot.lane.b32.xlu0 %v1496_v26, %s4435_s7  ;;  %1776 = vrot.lane.b32.xlu1 %v1761_v20, %s3467_s28 }
 0xcdf   :  { %1600 = vrot.lane.b32.xlu0 %v1493_v21, %s4435_s7  ;;  %1772 = vrot.lane.b32.xlu1 %v1759_v36, %s3467_s28 }
 0xce3   :  { %1873 = vrot.lane.b32.xlu0 %v1764_v22, %s4435_s7  ;;  %1604 = vrot.lane.b32.xlu1 %v1495_v33, %s4435_s7 }
 0xd41   :  { %v1508_v23 = vpop.permute.xlu1 %1507  ;;  %v1506_v24 = vpop.permute.xlu0 %1505 }
 0xd42   :  { %3221 = vmatpush3.xpose.msk.msra.mxu0 %vm293_vm2, %v1508_v23 }
 0xd43   :  { %3222 = vmatprep.subr.mxu0 %v3466_v25 }
 0xd45   :  { %v1775_v30 = vpop.permute.xlu0 %1774  ;;  %v1504_v31 = vpop.permute.xlu1 %1503 }
 0xd46   :  { %3223 = vmatpush3.xpose.msk.msra.mxu0 %vm293_vm2, %v1506_v24 }
 0xd47   :  { %3224 = vmatprep.subr.mxu0 %v3466_v25 }
 0xd49   :  { %v1771_v32 = vpop.permute.xlu0 %1770  ;;  %v1502_v34 = vpop.permute.xlu1 %1501 }
 0xd4a   :  { %3225 = vmatpush3.xpose.msk.msra.mxu0 %vm293_vm2, %v1504_v31 }
 0xd4b   :  { %3226 = vmatprep.subr.mxu0 %v3466_v25 }
 0xd4d   :  { %v1607_v45 = vpop.permute.xlu0 %1606  ;;  %v1777_v35 = vpop.permute.xlu1 %1776 }
 0xd4e   :  { %3227 = vmatpush3.xpose.msk.msra.mxu0 %vm293_vm2, %v1502_v34  ;;  %3232 = vmatpush3.msra.mxu1 %v1607_v45 }
 0xd4f   :  { %3253 = vmatprep.subr.mxu0 %v3466_v25  ;;  %3233 = vmatprep.subr.mxu1 %v3466_v25 }
 0xd51   :  { %v1773_v38 = vpop.permute.xlu1 %1772  ;;  %3229 = vmatmul.mubr.msk.f32.vlgmr.msra.gmra.mxu0 %vm293_vm2, %v1488_v37  ;;  %v1601_v59 = vpop.permute.xlu0 %1600 }
 0xd52   :  { %3254 = vmatpush3.xpose.msk.msra.mxu0 %vm293_vm2, %v1777_v35  ;;  %3261 = vmatprep.mubr.msk.f32.mxu0 %vm3468_vm3, %v3466_v25 }
 0xd53   :  { %3255 = vmatprep.subr.mxu0 %v3466_v25 }
 0xd55   :  { %v1605_v39 = vpop.permute.xlu1 %1604  ;;  %v1874_v43 = vpop.permute.xlu0 %1873 }
 0xd56   :  { %3234 = vmatpush3.msra.mxu1 %v1605_v39  ;;  %3256 = vmatpush3.xpose.msk.msra.mxu0 %vm293_vm2, %v1775_v30  ;;  %v2875_v39 = vld [vmem:[%s4387_s13 + $0x38] sm:$0xff] }
 0xd57   :  { %3257 = vmatprep.subr.mxu0 %v3466_v25  ;;  %3235 = vmatprep.subr.mxu1 %v3466_v25 }
 0xd5a   :  { %3258 = vmatpush3.xpose.msk.msra.mxu0 %vm293_vm2, %v1773_v38 }
 0xd5b   :  { %3259 = vmatprep.subr.mxu0 %v3466_v25 }
 0xd5e   :  { %3260 = vmatpush3.xpose.msk.msra.mxu0 %vm293_vm2, %v1771_v32 }
 0xd61   :  { %3262 = vmatmul.mubr.msk.f32.vlgmr.msra.gmra.mxu0 %vm293_vm2, %v1757_v40  ;;  %v2874_v40 = vld [vmem:[%s4387_s13 + $0x30] sm:$0xff] }
 0xe11   :  { %v1586_v2 = vpop.f32.mrf.mxu0 }
 0xe12   :  { %v1587_v0 = vadd.f32 %v3873_v61, %v1586_v2  ;;  %v2873_v2 = vld [vmem:[%s4387_s13 + $0x28] sm:$0xff] }
 0xe13   :  { %v3230_v29 = vpop.f32.mrf.mxu0 }
 0xe14   :  { %v1590_v41 = vsel %vm293_vm2, %v1587_v0, -inf }
 0xe15   :  { %1591 = vmax.xlane.f32.xlu1 %v1590_v41 }
 0xe21   :  { %v1855_v42 = vpop.f32.mrf.mxu0 }
 0xe22   :  { %v1856_v44 = vadd.f32 %v3873_v61, %v1855_v42  ;;  %v1762_v61 = vmul.f32 %v4052_v14, %v3852_v51 }
 0xe23   :  { %v3263_v46 = vpop.f32.mrf.mxu0 }
 0xe24   :  { %v1859_v48 = vsel %vm293_vm2, %v1856_v44, -inf }
 0xe25   :  { %1860 = vmax.xlane.f32.xlu0 %v1859_v48 }
 0xe26   :  { %1602 = vrot.lane.b32.xlu1 %v1494_v50, %s4435_s7 }
 0xe2a   :  { %1875 = vrot.lane.b32.xlu1 %v1765_v52, %s4435_s7  ;;  %v2870_v52 = vld [vmem:[%s4385_s11 + $0x1] ss:$0 sm:$0xff] }
 0xe2e   :  { %1871 = vrot.lane.b32.xlu1 %v1763_v54, %s4435_s7 }
 0xe3b   :  { %1869 = vrot.lane.b32.xlu0 %v1762_v61, %s4435_s7 }
 0xe9e   :  { %v1592_v55 = vpop.xlane.xlu1 %1591 }
 0xe9f   :  { %v1593_v56 = vsub.f32 %v1587_v0, %v1592_v55  ;;  %v2872_v0 = vld [vmem:[%s4387_s13 + $0x20] sm:$0xff] }
 0xea1   :  { %v1594_v57 = vmul.f32 1.442695, %v1593_v56 }
 0xea2   :  { %v1603_v58 = vpop.permute.xlu1 %1602 }
 0xea3   :  { %3417 = vpow2.f32 %v1594_v57  ;;  %3236 = vmatpush3.msra.mxu1 %v1603_v58  ;;  %v2871_v57 = vld [vmem:[%s4386_s12 + $0x1] ss:$0 sm:$0xff] }
 0xea4   :  { %3237 = vmatprep.subr.mxu1 %v3466_v25 }
 0xea5   :  { %3238 = vmatpush3.msra.mxu1 %v1601_v59 }
 0xea6   :  { %3242 = vmatprep.subr.mxu1 %v3466_v25  ;;  %v1876_v51 = vpop.permute.xlu1 %1875 }
 0xeaa   :  { %v1872_v1 = vpop.permute.xlu1 %1871 }
 0xeae   :  { %v1861_v47 = vpop.xlane.xlu0 %1860 }
 0xeaf   :  { %v1862_v60 = vsub.f32 %v1856_v44, %v1861_v47  ;;  %v2887_v47 = vld [vmem:[%s4389_s15 + $0x78] sm:$0xff] }
 0xeb0   :  { %v3418_v62 = vpop.eup %3417 }
 0xeb1   :  { %v1863_v63 = vmul.f32 1.442695, %v1862_v60  ;;  %3240 = vmatmul.mubr.msk.f32.vlgmr.msra.gmra.mxu1 %vm293_vm2, %v3418_v62  ;;  %v2886_v60 = vld [vmem:[%s4389_s15 + $0x70] sm:$0xff] }
 0xeb2   :  { %3243 = vmatpush3.msra.mxu1 %v3763_v6  ;;  %3250 = vmatprep.mubr.msk.f32.mxu1 %vm3468_vm3, %v3466_v25  ;;  %v1870_v3 = vpop.permute.xlu0 %1869 }
 0xeb3   :  { %3419 = vpow2.f32 %v1863_v63  ;;  %3244 = vmatprep.subr.mxu1 %v3466_v25  ;;  %v2884_v63 = vld [vmem:[%s4389_s15 + $0x60] sm:$0xff] }
 0xeb4   :  { %3245 = vmatpush3.msra.mxu1 %v3758_v5 }
 0xeb5   :  { %3246 = vmatprep.subr.mxu1 %v3466_v25 }
 0xeb6   :  { %3247 = vmatpush3.msra.mxu1 %v3770_v7 }
 0xeb7   :  { %3248 = vmatprep.subr.mxu1 %v3466_v25 }
 0xeb8   :  { %3249 = vmatpush3.msra.mxu1 %v3776_v8 }
 0xeb9   :  { %3251 = vmatmul.mubr.msk.f32.vlgmr.msra.gmra.mxu1 %vm293_vm2, %v3418_v62  ;;  %3264 = vmatprep.subr.mxu1 %v3466_v25  ;;  %v2885_v62 = vld [vmem:[%s4389_s15 + $0x68] sm:$0xff] }
 0xeba   :  { %3265 = vmatpush3.msra.mxu1 %v1876_v51  ;;  %3272 = vmatprep.mubr.msk.f32.mxu1 %vm3468_vm3, %v3466_v25  ;;  %v2883_v51 = vld [vmem:[%s4389_s15 + $0x58] sm:$0xff] }
 0xebb   :  { %3266 = vmatprep.subr.mxu1 %v3466_v25 }
 0xebc   :  { %3267 = vmatpush3.msra.mxu1 %v1874_v43 }
 0xebd   :  { %3268 = vmatprep.subr.mxu1 %v3466_v25 }
 0xebe   :  { %3269 = vmatpush3.msra.mxu1 %v1872_v1  ;;  %v2882_v1 = vld [vmem:[%s4389_s15 + $0x50] sm:$0xff] }
 0xebf   :  { %3270 = vmatprep.subr.mxu1 %v3466_v25 }
 0xec0   :  { %v3420_v4 = vpop.eup %3419  ;;  %3271 = vmatpush3.msra.mxu1 %v1870_v3  ;;  %v2881_v3 = vld [vmem:[%s4389_s15 + $0x48] sm:$0xff] }
 0xec1   :  { %3275 = vmatprep.subr.mxu1 %v3466_v25  ;;  %3273 = vmatmul.mubr.msk.f32.vlgmr.msra.gmra.mxu1 %vm293_vm2, %v3420_v4 }
 0xec2   :  { %3276 = vmatpush3.msra.mxu1 %v3763_v6  ;;  %3283 = vmatprep.mubr.msk.f32.mxu1 %vm3468_vm3, %v3466_v25  ;;  %v2863_v6 = vld [vmem:[%s4433_s5 + $0x38] sm:$0xff] }
 0xec3   :  { %3277 = vmatprep.subr.mxu1 %v3466_v25  ;;  %3286 = vmatprep.subr.mxu0 %v2863_v6 }
 0xec4   :  { %3278 = vmatpush3.msra.mxu1 %v3758_v5  ;;  %3287 = vmatpush3.msra.mxu0 %v2863_v6  ;;  %v2861_v5 = vld [vmem:[%s4433_s5 + $0x28] sm:$0xff]  ;;  %v2877_v6 = vld [vmem:[%s4388_s14 + $0x1] ss:$0 sm:$0xff] }
 0xec5   :  { %3279 = vmatprep.subr.mxu1 %v3466_v25  ;;  %3288 = vmatprep.subr.mxu0 %v2862_v9 }
 0xec6   :  { %3280 = vmatpush3.msra.mxu1 %v3770_v7  ;;  %3289 = vmatpush3.msra.mxu0 %v2862_v9  ;;  %v2860_v7 = vld [vmem:[%s4433_s5 + $0x20] sm:$0xff] }
 0xec7   :  { %3281 = vmatprep.subr.mxu1 %v3466_v25  ;;  %3290 = vmatprep.subr.mxu0 %v2861_v5 }
 0xec8   :  { %3282 = vmatpush3.msra.mxu1 %v3776_v8  ;;  %3291 = vmatpush3.msra.mxu0 %v2861_v5 }
 0xec9   :  { %3284 = vmatmul.mubr.msk.f32.vlgmr.msra.gmra.mxu1 %vm293_vm2, %v3420_v4  ;;  %3292 = vmatprep.subr.mxu0 %v2860_v7  ;;  %v2880_v4 = vld [vmem:[%s4389_s15 + $0x40] sm:$0xff] }
 0xeca   :  { %3293 = vmatpush3.msra.mxu0 %v2860_v7  ;;  %3297 = vmatprep.subr.mxu1 %v2875_v39 }
 0xecb   :  { %3298 = vmatpush3.msra.mxu1 %v2875_v39  ;;  %3308 = vmatprep.subr.mxu0 %v2887_v47 }
 0xecc   :  { %3299 = vmatprep.subr.mxu1 %v2874_v40 }
 0xecd   :  { %3300 = vmatpush3.msra.mxu1 %v2874_v40 }
 0xece   :  { %3301 = vmatprep.subr.mxu1 %v2873_v2 }
 0xecf   :  { %3302 = vmatpush3.msra.mxu1 %v2873_v2 }
 0xed0   :  { %3303 = vmatprep.subr.mxu1 %v2872_v0 }
 0xed1   :  { %3304 = vmatpush3.msra.mxu1 %v2872_v0 }
 0xed2   :  { %3327 = vmatprep.subr.mxu1 %v3466_v25 }
 0xf71   :  { %v1681_v8 = vpop.f32.mrf.mxu1 }
 0xf73   :  { %v3241_v10 = vpop.f32.mrf.mxu1 }
 0xf79   :  { %v1751_v11 = vpop.f32.mrf.mxu1 }
 0xf7a   :  { %3421 = vrcp.f32 %v1751_v11 }
 0xf7b   :  { %v3252_v12 = vpop.f32.mrf.mxu1 }
 0xf81   :  { %v1950_v13 = vpop.f32.mrf.mxu1 }
 0xf83   :  { %v3274_v53 = vpop.f32.mrf.mxu1 }
 0xf87   :  { %v3422_v14 = vpop.eup %3421 }
 0xf88   :  { %v1756_v49 = vmul.f32 %v3422_v14, %v1681_v8 }
 0xf89   :  { %v2020_v15 = vpop.f32.mrf.mxu1 }
 0xf8a   :  { %3423 = vrcp.f32 %v2020_v15  ;;  %3294 = vmatprep.mubr.msk.f32.mxu0 %vm293_vm2, %v1756_v49 }
 0xf8b   :  { %v3285_v16 = vpop.f32.mrf.mxu1 }
 0xf97   :  { %v3424_v17 = vpop.eup %3423 }
 0xf98   :  { %v2025_v18 = vmul.f32 %v3424_v17, %v1950_v13 }
 0xf9a   :  { %3295 = vmatmul.mubr.msk.f32.vlgmr.msra.gmra.mxu0 %vm293_vm2, %v2025_v18 }
 0xf9b   :  { %3309 = vmatpush3.msra.mxu0 %v2887_v47  ;;  %v2511_v47 = vld [vmem:[%s4395_s21 + $0x18] sm:$0xff] }
 0xf9c   :  { %3310 = vmatprep.subr.mxu0 %v2886_v60 }
 0xf9d   :  { %3311 = vmatpush3.msra.mxu0 %v2886_v60  ;;  %v2510_v60 = vld [vmem:[%s4395_s21 + $0x10] sm:$0xff] }
 0xf9e   :  { %3312 = vmatprep.subr.mxu0 %v2885_v62 }
 0xf9f   :  { %3313 = vmatpush3.msra.mxu0 %v2885_v62  ;;  %v2509_v62 = vld [vmem:[%s4395_s21 + $0x8] sm:$0xff] }
 0xfa0   :  { %3314 = vmatprep.subr.mxu0 %v2884_v63 }
 0xfa1   :  { %3315 = vmatpush3.msra.mxu0 %v2884_v63  ;;  %v2508_v63 = vld [vmem:[%s4395_s21] sm:$0xff] }
 0xfa2   :  { %3316 = vmatprep.subr.mxu0 %v2883_v51 }
 0xfa3   :  { %3317 = vmatpush3.msra.mxu0 %v2883_v51  ;;  %v2894_v51 = vld [vmem:[%s4394_s20] ss:$0 sm:$0xff] }
 0xfa4   :  { %3318 = vmatprep.subr.mxu0 %v2882_v1 }
 0xfa5   :  { %3319 = vmatpush3.msra.mxu0 %v2882_v1 }
 0xfa6   :  { %3320 = vmatprep.subr.mxu0 %v2881_v3 }
 0xfa7   :  { %3321 = vmatpush3.msra.mxu0 %v2881_v3 }
 0xfa8   :  { %3322 = vmatprep.subr.mxu0 %v2880_v4 }
 0xfa9   :  { %3323 = vmatpush3.msra.mxu0 %v2880_v4 }
 0xfaa   :  { %3357 = vmatprep.subr.mxu0 %v3466_v25 }
0x105a   :  { %v3296_v26 = vpop.f32.mrf.mxu0 }
0x105b   :  { %v2117_v20 = vadd.f32 %v3296_v26, %v2865_v19 }
0x105c   :  { %v2111_v21 = vpop.f32.mrf.mxu0 }
0x105d   :  { %v4178_v36 = vadd.f32 %v2117_v20, %v4014_v28  ;;  %v2112_v22 = vadd.f32 %v2865_v19, %v2111_v21 }
0x105f   :  { %v4181_v33 = vadd.f32 %v2112_v22, %v4011_v27  ;;  %v2129_v23 = vsel %vm293_vm2, %v4178_v36, 0.0 }
0x1060   :  { %2130 = vadd.xlane.f32.xlu0 %v2129_v23 }
0x1061   :  { %v2126_v24 = vsel %vm293_vm2, %v4181_v33, 0.0 }
0x1062   :  { %2127 = vadd.xlane.f32.xlu1 %v2126_v24 }
0x10e9   :  { %v2131_v30 = vpop.xlane.xlu0 %2130 }
0x10ea   :  { %v2133_v31 = vmul.f32 0.03125, %v2131_v30  ;;  %v2889_v30 = vld [vmem:[%s4390_s16 + $0x1] ss:$0 sm:$0xff] }
0x10eb   :  { %v2128_v32 = vpop.xlane.xlu1 %2127 }
0x10ec   :  { %v2135_v34 = vsub.f32 %v4178_v36, %v2133_v31  ;;  %v2132_v45 = vmul.f32 0.03125, %v2128_v32 }
0x10ee   :  { %v2134_v28 = vsub.f32 %v4181_v33, %v2132_v45  ;;  %v2137_v35 = vmul.f32 %v2135_v34, %v2135_v34 }
0x10f0   :  { %v2141_v27 = vsel %vm293_vm2, %v2137_v35, 0.0  ;;  %v2136_v37 = vmul.f32 %v2134_v28, %v2134_v28 }
0x10f1   :  { %2142 = vadd.xlane.f32.xlu1 %v2141_v27 }
0x10f2   :  { %v2138_v38 = vsel %vm293_vm2, %v2136_v37, 0.0 }
0x10f3   :  { %2139 = vadd.xlane.f32.xlu0 %v2138_v38 }
0x117a   :  { %v2143_v29 = vpop.xlane.xlu1 %2142 }
0x117b   :  { %v2145_v41 = vmul.f32 0.03125, %v2143_v29 }
0x117c   :  { %v2140_v42 = vpop.xlane.xlu0 %2139 }
0x117d   :  { %v2147_v44 = vadd.f32 1e-06, %v2145_v41  ;;  %v2144_v46 = vmul.f32 0.03125, %v2140_v42  ;;  %v2416_v41 = vld [vmem:[%s4393_s19 + $0x8] sm:$0xff]  ;;  %v2415_v42 = vld [vmem:[%s4393_s19] sm:$0xff] }
0x117f   :  { %3425 = vrsqrt.f32 %v2147_v44  ;;  %v2146_v48 = vadd.f32 1e-06, %v2144_v46 }
0x1181   :  { %3427 = vrsqrt.f32 %v2146_v48 }
0x118c   :  { %v3426_v50 = vpop.eup %3425 }
0x118d   :  { %v2151_v54 = vmul.f32 %v3426_v50, %v2135_v34 }
0x118e   :  { %v3428_v61 = vpop.eup %3427 }
0x118f   :  { %v2150_v55 = vmul.f32 %v3428_v61, %v2134_v28  ;;  %v2159_v56 = vmul.f32 %v2870_v52, %v2151_v54  ;;  %v2893_v61 = vld [vmem:[%s4392_s18] ss:$0 sm:$0xff] }
0x1191   :  { %v2158_v58 = vmul.f32 %v2870_v52, %v2150_v55  ;;  %v2167_v43 = vadd.f32 %v2871_v57, %v2159_v56  ;;  %v2892_v52 = vld [vmem:[%s4391_s17] ss:$0 sm:$0xff] }
0x1193   :  { %v2166_v59 = vadd.f32 %v2871_v57, %v2158_v58  ;;  %v2515_v57 = vld [vmem:[%s4395_s21 + $0x38] sm:$0xff]  ;;  %v2514_v58 = vld [vmem:[%s4395_s21 + $0x30] sm:$0xff] }
0x1195   :  { %3305 = vmatprep.mubr.msk.f32.mxu1 %vm293_vm2, %v2166_v59  ;;  %v2513_v59 = vld [vmem:[%s4395_s21 + $0x28] sm:$0xff] }
0x1196   :  { %3306 = vmatmul.mubr.msk.f32.vlgmr.msra.gmra.mxu1 %vm293_vm2, %v2167_v43  ;;  %v2512_v43 = vld [vmem:[%s4395_s21 + $0x20] sm:$0xff] }
0x1197   :  { %3335 = vmatprep.mubr.msk.f32.mxu1 %vm3468_vm3, %v3466_v25 }
0x1256   :  { %v3307_v9 = vpop.f32.mrf.mxu1 }
0x1257   :  { %v2259_v5 = vadd.f32 %v3307_v9, %v2877_v6 }
0x1258   :  { %v2253_v7 = vpop.f32.mrf.mxu1 }
0x1259   :  { %v2263_v8 = vmul.f32 %v2259_v5, %v2259_v5  ;;  %v2254_v10 = vadd.f32 %v2877_v6, %v2253_v7 }
0x125b   :  { %v2265_v11 = vmul.f32 %v2263_v8, %v2259_v5  ;;  %v2262_v12 = vmul.f32 %v2254_v10, %v2254_v10 }
0x125d   :  { %v2267_v13 = vmul.f32 0.044715, %v2265_v11  ;;  %v2264_v53 = vmul.f32 %v2262_v12, %v2254_v10 }
0x125f   :  { %v2269_v14 = vadd.f32 %v2267_v13, %v2259_v5  ;;  %v2266_v49 = vmul.f32 0.044715, %v2264_v53  ;;  %v2612_v53 = vld [vmem:[%s4397_s23 + $0x38] sm:$0xff] }
0x1261   :  { %v2271_v15 = vmul.f32 0.7978846, %v2269_v14  ;;  %v2268_v16 = vadd.f32 %v2266_v49, %v2254_v10  ;;  %v2611_v14 = vld [vmem:[%s4397_s23 + $0x30] sm:$0xff]  ;;  %v2610_v49 = vld [vmem:[%s4397_s23 + $0x28] sm:$0xff] }
0x1263   :  { %3429 = vtanh.f32 %v2271_v15  ;;  %v2270_v17 = vmul.f32 0.7978846, %v2268_v16  ;;  %v2609_v15 = vld [vmem:[%s4397_s23 + $0x20] sm:$0xff]  ;;  %v2608_v16 = vld [vmem:[%s4397_s23 + $0x18] sm:$0xff] }
0x1265   :  { %3431 = vtanh.f32 %v2270_v17  ;;  %v2607_v17 = vld [vmem:[%s4397_s23 + $0x10] sm:$0xff] }
0x1270   :  { %v3430_v18 = vpop.eup %3429 }
0x1271   :  { %v2275_v19 = vadd.f32 1.0, %v3430_v18  ;;  %v2606_v18 = vld [vmem:[%s4397_s23 + $0x8] sm:$0xff] }
0x1272   :  { %v3432_v26 = vpop.eup %3431 }
0x1273   :  { %v2274_v20 = vadd.f32 1.0, %v3432_v26  ;;  %v2277_v21 = vmul.f32 0.5, %v2275_v19  ;;  %v2605_v19 = vld [vmem:[%s4397_s23] sm:$0xff] }
0x1274   :  { %v2896_v26 = vld [vmem:[%s4396_s22] ss:$0 sm:$0xff] }
0x1275   :  { %v2276_v22 = vmul.f32 0.5, %v2274_v20  ;;  %v2279_v24 = vmul.f32 %v2277_v21, %v2259_v5 }
0x1277   :  { %v2278_v23 = vmul.f32 %v2276_v22, %v2254_v10 }
0x1279   :  { %3324 = vmatprep.mubr.msk.f32.mxu0 %vm1264_vm4, %v2278_v23 }
0x127a   :  { %3325 = vmatmul.mubr.msk.f32.vlgmr.msra.gmra.mxu0 %vm1264_vm4, %v2279_v24 }
0x127b   :  { %3373 = vmatprep.mubr.msk.f32.mxu0 %vm3468_vm3, %v3466_v25  ;;  %3358 = vmatpush3.msra.mxu0 %v2612_v53 }
0x127c   :  { %3359 = vmatprep.subr.mxu0 %v3466_v25 }
0x127d   :  { %3360 = vmatpush3.msra.mxu0 %v2611_v14 }
0x127e   :  { %3361 = vmatprep.subr.mxu0 %v3466_v25 }
0x127f   :  { %3362 = vmatpush3.msra.mxu0 %v2610_v49 }
0x1280   :  { %3363 = vmatprep.subr.mxu0 %v3466_v25 }
0x1281   :  { %3364 = vmatpush3.msra.mxu0 %v2609_v15 }
0x1282   :  { %3365 = vmatprep.subr.mxu0 %v3466_v25 }
0x1283   :  { %3366 = vmatpush3.msra.mxu0 %v2608_v16 }
0x1284   :  { %3367 = vmatprep.subr.mxu0 %v3466_v25 }
0x1285   :  { %3368 = vmatpush3.msra.mxu0 %v2607_v17 }
0x1286   :  { %3369 = vmatprep.subr.mxu0 %v3466_v25 }
0x1287   :  { %3370 = vmatpush3.msra.mxu0 %v2606_v18 }
0x1288   :  { %3371 = vmatprep.subr.mxu0 %v3466_v25 }
0x1289   :  { %3372 = vmatpush3.msra.mxu0 %v2605_v19 }
0x133a   :  { %v3326_v31 = vpop.f32.mrf.mxu0 }
0x133b   :  { %v2375_v32 = vadd.f32 %v3326_v31, %v2889_v30 }
0x133c   :  { %v2369_v34 = vpop.f32.mrf.mxu0 }
0x133d   :  { %v2379_v45 = vadd.f32 %v2375_v32, %v4178_v36  ;;  %v2370_v28 = vadd.f32 %v2889_v30, %v2369_v34  ;;  %v2418_v36 = vld [vmem:[%s4393_s19 + $0x18] sm:$0xff] }
0x133e   :  { %3328 = vmatpush3.msra.mxu1 %v2418_v36  ;;  %v2708_v36 = vld [vmem:[%s4399_s25 + $0x8] sm:$0xff] }
0x133f   :  { %v2381_v35 = vrot.slane %v2379_v45, 7  ;;  %v2378_v27 = vadd.f32 %v2370_v28, %v4181_v33  ;;  %v2417_v33 = vld [vmem:[%s4393_s19 + $0x10] sm:$0xff]  ;;  %3329 = vmatprep.subr.mxu1 %v3466_v25 }
0x1340   :  { %3330 = vmatpush3.msra.mxu1 %v2417_v33  ;;  %v2707_v33 = vld [vmem:[%s4399_s25] sm:$0xff] }
0x1341   :  { %v2384_v37 = vsel %vm2383_vm5, %v2378_v27, %v2381_v35  ;;  %3331 = vmatprep.subr.mxu1 %v3466_v25  ;;  %v2898_v27 = vld [vmem:[%s4398_s24] ss:$0 sm:$0xff] }
0x1342   :  { %v2388_v38 = vsel %vm2387_vm6, %v2384_v37, 0.0  ;;  %3332 = vmatpush3.msra.mxu1 %v2416_v41 }
0x1343   :  { %2389 = vadd.xlane.f32.xlu0 %v2388_v38  ;;  %3333 = vmatprep.subr.mxu1 %v3466_v25 }
0x1344   :  { %3334 = vmatpush3.msra.mxu1 %v2415_v42 }
0x1345   :  { %3338 = vmatprep.subr.mxu1 %v3466_v25 }
0x13cc   :  { %v2390_v39 = vpop.xlane.xlu0 %2389 }
0x13cd   :  { %v2391_v40 = vmul.f32 0.03125, %v2390_v39 }
0x13cf   :  { %v2392_v2 = vsub.f32 %v2384_v37, %v2391_v40 }
0x13d1   :  { %v2393_v0 = vmul.f32 %v2392_v2, %v2392_v2 }
0x13d3   :  { %v2394_v29 = vsel %vm2387_vm6, %v2393_v0, 0.0  ;;  %v2710_v0 = vld [vmem:[%s4399_s25 + $0x18] sm:$0xff] }
0x13d4   :  { %2395 = vadd.xlane.f32.xlu1 %v2394_v29  ;;  %v2709_v29 = vld [vmem:[%s4399_s25 + $0x10] sm:$0xff]  ;;  %s3470_s25 = smov [#allocation2]  }
0x13d5   :  { %s2792_s12 = sshll.u32 %s3470_s25, 4  ;;  %s2793_s12 = int_to_ptr.vmem [resolvable:$true] %s2792_s12 }
0x13d6   :  { %s3443_s21 = scalar_lea.vmem %s2793_s12, 32  ;;  %p3448_p1 = scmp.lt.s32.totalorder %s2793_s12, %s2793_s12 }
0x13d7   :  { %p3444_p0 = scmp.ne.s32.totalorder %s2793_s12, %s3443_s21  ;;  %p3449_p2 = scmp.lt.s32.totalorder %s3443_s21, %s3443_s21 }
0x13d9   :  { %p3450_p3 = por %p3449_p2, %p3448_p1 }
0x13db   :  { %p3451_p4 = pnand %p3450_p3, %p3444_p0 }
0x145d   :  { %v2396_v44 = vpop.xlane.xlu1 %2395 }
0x145e   :  { %v2397_v46 = vmul.f32 0.03125, %v2396_v44 }
0x1460   :  { %v2398_v48 = vadd.f32 1e-06, %v2397_v46 }
0x1462   :  { %3433 = vrsqrt.f32 %v2398_v48 }
0x146f   :  { %v3434_v50 = vpop.eup %3433 }
0x1470   :  { %v2400_v54 = vmul.f32 %v3434_v50, %v2392_v2 }
0x1472   :  { %v2407_v55 = vmul.f32 %v2892_v52, %v2400_v54 }
0x1474   :  { %v2414_v56 = vadd.f32 %v2893_v61, %v2407_v55 }
0x1476   :  { %3336 = vmatmul.mubr.msk.f32.vlgmr.msra.gmra.mxu1 %vm293_vm2, %v2414_v56 }
0x1477   :  { %3354 = vmatprep.mubr.msk.f32.mxu1 %vm3468_vm3, %v3466_v25  ;;  %3339 = vmatpush3.msra.mxu1 %v2515_v57 }
0x1478   :  { %3340 = vmatprep.subr.mxu1 %v3466_v25 }
0x1479   :  { %3341 = vmatpush3.msra.mxu1 %v2514_v58 }
0x147a   :  { %3342 = vmatprep.subr.mxu1 %v3466_v25 }
0x147b   :  { %3343 = vmatpush3.msra.mxu1 %v2513_v59 }
0x147c   :  { %3344 = vmatprep.subr.mxu1 %v3466_v25 }
0x147d   :  { %3345 = vmatpush3.msra.mxu1 %v2512_v43 }
0x147e   :  { %3346 = vmatprep.subr.mxu1 %v3466_v25 }
0x147f   :  { %3347 = vmatpush3.msra.mxu1 %v2511_v47 }
0x1480   :  { %3348 = vmatprep.subr.mxu1 %v3466_v25 }
0x1481   :  { %3349 = vmatpush3.msra.mxu1 %v2510_v60 }
0x1482   :  { %3350 = vmatprep.subr.mxu1 %v3466_v25 }
0x1483   :  { %3351 = vmatpush3.msra.mxu1 %v2509_v62 }
0x1484   :  { %3352 = vmatprep.subr.mxu1 %v3466_v25 }
0x1485   :  { %3353 = vmatpush3.msra.mxu1 %v2508_v63 }
0x1486   :  { %3376 = vmatprep.subr.mxu1 %v3466_v25 }
0x1536   :  { %v2495_v1 = vpop.f32.mrf.mxu1 }
0x1537   :  { %v2496_v3 = vadd.f32 %v2894_v51, %v2495_v1 }
0x1538   :  { %v3337_v4 = vpop.f32.mrf.mxu1 }
0x1539   :  { %v2499_v6 = vmul.f32 %v2496_v3, %v2496_v3 }
0x153b   :  { %v2500_v9 = vmul.f32 %v2499_v6, %v2496_v3 }
0x153d   :  { %v2501_v5 = vmul.f32 0.044715, %v2500_v9 }
0x153f   :  { %v2502_v7 = vadd.f32 %v2501_v5, %v2496_v3 }
0x1541   :  { %v2503_v8 = vmul.f32 0.7978846, %v2502_v7 }
0x1543   :  { %3435 = vtanh.f32 %v2503_v8 }
0x1550   :  { %v3436_v10 = vpop.eup %3435 }
0x1551   :  { %v2505_v11 = vadd.f32 1.0, %v3436_v10 }
0x1553   :  { %v2506_v12 = vmul.f32 0.5, %v2505_v11 }
0x1555   :  { %v2507_v13 = vmul.f32 %v2506_v12, %v2496_v3 }
0x1557   :  { %3355 = vmatmul.mubr.msk.f32.vlgmr.msra.gmra.mxu1 %vm1264_vm4, %v2507_v13 }
0x1558   :  { %3384 = vmatprep.mubr.msk.f32.mxu1 %vm3468_vm3, %v3466_v25  ;;  %3377 = vmatpush3.msra.mxu1 %v2710_v0 }
0x1559   :  { %3378 = vmatprep.subr.mxu1 %v3466_v25 }
0x155a   :  { %3379 = vmatpush3.msra.mxu1 %v2709_v29 }
0x155b   :  { %3380 = vmatprep.subr.mxu1 %v3466_v25 }
0x155c   :  { %3381 = vmatpush3.msra.mxu1 %v2708_v36 }
0x155d   :  { %3382 = vmatprep.subr.mxu1 %v3466_v25 }
0x155e   :  { %3383 = vmatpush3.msra.mxu1 %v2707_v33 }
0x1617   :  { %v2592_v20 = vpop.f32.mrf.mxu1 }
0x1618   :  { %v2593_v21 = vadd.f32 %v2896_v26, %v2592_v20 }
0x1619   :  { %v3356_v22 = vpop.f32.mrf.mxu1 }
0x161a   :  { %v2596_v23 = vmul.f32 %v2593_v21, %v2593_v21 }
0x161c   :  { %v2597_v24 = vmul.f32 %v2596_v23, %v2593_v21 }
0x161e   :  { %v2598_v30 = vmul.f32 0.044715, %v2597_v24 }
0x1620   :  { %v2599_v31 = vadd.f32 %v2598_v30, %v2593_v21 }
0x1622   :  { %v2600_v32 = vmul.f32 0.7978846, %v2599_v31 }
0x1624   :  { %3437 = vtanh.f32 %v2600_v32 }
0x1631   :  { %v3438_v34 = vpop.eup %3437 }
0x1632   :  { %v2602_v45 = vadd.f32 1.0, %v3438_v34 }
0x1634   :  { %v2603_v28 = vmul.f32 0.5, %v2602_v45 }
0x1636   :  { %v2604_v35 = vmul.f32 %v2603_v28, %v2593_v21 }
0x1638   :  { %3374 = vmatmul.mubr.msk.f32.vlgmr.msra.gmra.mxu0 %vm1264_vm4, %v2604_v35 }
0x16f8   :  { %v2689_v37 = vpop.f32.mrf.mxu0 }
0x16f9   :  { %v2690_v38 = vadd.f32 %v2898_v27, %v2689_v37 }
0x16fa   :  { %v3375_v39 = vpop.f32.mrf.mxu0 }
0x16fb   :  { %v2693_v40 = vmul.f32 %v2690_v38, %v2690_v38 }
0x16fd   :  { %v2694_v2 = vsel %vm2387_vm6, %v2693_v40, 0.0 }
0x16fe   :  { %2695 = vadd.xlane.f32.xlu0 %v2694_v2 }
0x1787   :  { %v2696_v41 = vpop.xlane.xlu0 %2695 }
0x1788   :  { %3439 = vrsqrt.f32 %v2696_v41  ;;  %vm2699_vm7 = vcmp.eq.f32.partialorder %v2696_v41, inf  ;;  %v2702_v46 = vand.u32 2147483648, %v2696_v41  ;;  %vm2701_vm8 = vcmp.eq.f32.partialorder %v2696_v41, 0.0 }
0x1795   :  { %v3440_v42 = vpop.eup %3439 }
0x1796   :  { %v2698_v44 = vmul.f32 %v3440_v42, %v2696_v41 }
0x1798   :  { %v2700_v48 = vsel %vm2699_vm7, %v2696_v41, %v2698_v44 }
0x1799   :  { %v2703_v50 = vsel %vm2701_vm8, %v2702_v46, %v2700_v48 }
0x179a   :  { %v2704_v52 = vmax.f32 %v2703_v50, 1e-12 }
0x179c   :  { %3441 = vrcp.f32 %v2704_v52 }
0x17a9   :  { %v3442_v54 = vpop.eup %3441 }
0x17aa   :  { %v2706_v61 = vmul.f32 %v3442_v54, %v2690_v38 }
0x17ac   :  { %3385 = vmatmul.mubr.msk.f32.vlgmr.msra.gmra.mxu1 %vm293_vm2, %v2706_v61 }
0x186c   :  { %v2780_v25 = vpop.f32.mrf.mxu1 }
0x186d   :  { %2785 = vst.msk [vmem:[#allocation2] sm:$0x3] %vm2784_vm9, %v2780_v25 }
0x186e   :  { %v3386_v55 = vpop.f32.mrf.mxu1 }
0x186f   :  { %3454 = shalt.err (!%p3451_p4)
}
0x1870   :  { %2795 = dma.vmem_to_hbm [thread:$0]  %s2793_s12, 32, %s4400_s26, [#allocation3]  }
0x1871   :  { %3463 = dma.done.wait [#allocation3], 32  }
0x1872   :  { %3464 = vsyncadd [#allocation3], 4294967264 }
0x1873   :  { %2799 = vsyncpa [#allocation3], 1 }

</bundles_post_ra>
